<compile_context>
chip_gen: v7x
topology: tpu7x:2x2x1
jax: 0.10.0
libtpu: 0.0.40
codegen_flags: <defaults>
</compile_context>

<pallas_src>
import functools

import jax
import jax.numpy as jnp
from jax import lax
from jax.experimental import pallas as pl
from jax.experimental.pallas import tpu as pltpu


def codeemb_kernel(ids_sref,     # SMEM  (N_pad,) int32   scalar-prefetched flattened input ids
                   ty_ids_ref,   # VMEM  (TILE, 1) int32  type ids for this tile
                   in_emb_hbm,   # HBM   (V, E)           input-id embedding table
                   ty_emb_ref,   # VMEM  (T, E)           type-id embedding table (tiny)
                   gamma_ref,    # VMEM  (1, E)           LayerNorm weight
                   beta_ref,     # VMEM  (1, E)           LayerNorm bias
                   out_ref,      # VMEM  (TILE, E)        output tile
                   gbuf,         # VMEM  (2, TILE, E)     double-buffered gather landing buffer
                   copy_sem,     # DMA semaphores (2,)    one per gather slot
                   *, unroll):
    tile, emb_dim = out_ref.shape
    n_types = ty_emb_ref.shape[0]

    p = pl.program_id(0)          # "parallel" chunk (megacore split on v7x)
    q = pl.program_id(1)          # sequential steps within the chunk
    n_q = pl.num_programs(1)
    step = p * n_q + q            # global tile index
    slot = q % 2

    def issue_gather(tile_step, dst_slot):
        """Issue one async row DMA per token of `tile_step` into gbuf[dst_slot]."""
        base = tile_step * tile

        @pl.loop(0, tile // unroll)
        def _issue(chunk):
            s0 = pl.multiple_of(chunk * unroll, unroll)
            for u in range(unroll):               # static unroll -> co-issued descriptor pushes
                s = s0 + u
                row = ids_sref[base + s]          # scalar SMEM read (kept ahead of any wait)
                pltpu.make_async_copy(in_emb_hbm.at[row],
                                      gbuf.at[dst_slot, s],
                                      copy_sem.at[dst_slot]).start()

    # Prime the pipeline at the start of each core's sequential chunk.
    @pl.when(q == 0)
    def _():
        issue_gather(step, 0)

    # Cross-step prefetch: gather the *next* tile into the other slot; these
    # DMAs fly while this step's matmul + LayerNorm run.
    @pl.when(q + 1 < n_q)
    def _():
        issue_gather(step + 1, 1 - slot)

    # Type-id embedding via a tiny one-hot MXU matmul (overlaps the DMAs).
    ty_ids = ty_ids_ref[...]                                          # (TILE, 1) int32
    one_hot = (ty_ids == lax.broadcasted_iota(jnp.int32, (tile, n_types), 1)
               ).astype(ty_emb_ref.dtype)                             # (TILE, T)
    x_type = jnp.dot(one_hot, ty_emb_ref[...],
                     preferred_element_type=jnp.float32)              # (TILE, E) f32

    # Single aggregate wait for this slot: every issued row copy signals
    # copy_sem[slot] with its byte count, so one wait sized to the full
    # (TILE, E) transfer drains all TILE row copies at once.
    pltpu.make_async_copy(in_emb_hbm.at[pl.ds(0, tile)],
                          gbuf.at[slot],
                          copy_sem.at[slot]).wait()

    # Add + LayerNorm (two-pass variance -> no cancellation), affine, store.
    x = gbuf[slot].astype(jnp.float32) + x_type                       # (TILE, E)
    mean = jnp.mean(x, axis=-1, keepdims=True)                        # (TILE, 1)
    centered = x - mean
    var = jnp.mean(centered * centered, axis=-1, keepdims=True)       # biased var, >= 0
    y = centered * lax.rsqrt(var + 1e-12)
    y = y * gamma_ref[...] + beta_ref[...]                            # broadcast (1, E)
    # Dropout is identity in eval mode -> nothing to do.
    out_ref[...] = y.astype(out_ref.dtype)


def codeemb_forward(input_ids, type_ids, in_emb, ty_emb, gamma, beta, *,
                    tile=512, unroll=8, out_dtype=jnp.float32, core_split=2):
    B, S = input_ids.shape
    V, E = in_emb.shape
    T, E2 = ty_emb.shape
    assert E2 == E
    assert tile % unroll == 0 and tile % 8 == 0
    # The aggregate wait uses a (tile, E) slice of the table as a byte-size
    # proxy; realistic CodeEmb vocabularies (4k-21k codes) always satisfy it.
    assert V >= tile, "token tile must not exceed the input vocabulary size"
    assert in_emb.dtype.itemsize >= 4, "use a 32-bit embedding-table dtype"

    N = B * S
    num_tiles = -(-N // tile)
    # Outer "parallel" axis: lets v7x split contiguous chunks across its two
    # TensorCores; each chunk re-primes its own gather pipeline at q == 0.
    P = core_split if (core_split > 1 and num_tiles >= 2) else 1
    num_tiles = -(-num_tiles // P) * P
    Q = num_tiles // P
    n_pad = num_tiles * tile
    pad = n_pad - N

    # Clamp ids so a bad index can never trigger an OOB DMA (PyTorch would
    # raise instead; documented semantic difference).
    ids = jnp.clip(input_ids.reshape(N).astype(jnp.int32), 0, V - 1)
    tys = jnp.clip(type_ids.reshape(N).astype(jnp.int32), 0, T - 1)
    if pad:
        ids = jnp.concatenate([ids, jnp.zeros((pad,), jnp.int32)])
        tys = jnp.concatenate([tys, jnp.zeros((pad,), jnp.int32)])
    tys_col = tys.reshape(n_pad, 1)
    # TODO(synk): for very long B*S, feed ids as per-tile SMEM blocks instead
    # of one scalar-prefetch vector (1-D SMEM pads to next_pow2(4*N) bytes).

    kernel = functools.partial(codeemb_kernel, unroll=unroll)

    out = pl.pallas_call(
        kernel,
        out_shape=jax.ShapeDtypeStruct((n_pad, E), out_dtype),
        grid_spec=pltpu.PrefetchScalarGridSpec(
            num_scalar_prefetch=1,                       # flattened input ids -> SMEM
            grid=(P, Q),
            in_specs=[
                pl.BlockSpec((tile, 1), lambda p, q, ids_ref: (p * Q + q, 0)),  # type ids
                pl.BlockSpec(memory_space=pl.ANY),                               # input table (HBM)
                pl.BlockSpec((T, E), lambda p, q, ids_ref: (0, 0)),              # type table (VMEM)
                pl.BlockSpec((1, E), lambda p, q, ids_ref: (0, 0)),              # gamma
                pl.BlockSpec((1, E), lambda p, q, ids_ref: (0, 0)),              # beta
            ],
            out_specs=pl.BlockSpec((tile, E), lambda p, q, ids_ref: (p * Q + q, 0)),
            scratch_shapes=[
                pltpu.VMEM((2, tile, E), in_emb.dtype),   # double-buffered gather buffer
                pltpu.SemaphoreType.DMA((2,)),            # one DMA semaphore per slot
            ],
        ),
        compiler_params=pltpu.CompilerParams(
            # The inner axis carries the cross-step prefetch chain, so it must
            # run sequentially ("arbitrary"); the outer axis is parallel.
            dimension_semantics=("parallel", "arbitrary"),
            vmem_limit_bytes=32 * 1024 * 1024,
        ),
    )(ids, tys_col, in_emb, ty_emb,
      gamma.reshape(1, E).astype(jnp.float32),
      beta.reshape(1, E).astype(jnp.float32))

    return out[:N].reshape(B, S, E)


def reference_forward(input_ids, type_ids, in_emb, ty_emb, gamma, beta):
    x = in_emb[input_ids] + ty_emb[type_ids]
    mean = jnp.mean(x, axis=-1, keepdims=True)
    var = jnp.mean((x - mean) ** 2, axis=-1, keepdims=True)
    y = (x - mean) / jnp.sqrt(var + 1e-12)
    return y * gamma[None, None, :] + beta[None, None, :]


if __name__ == "__main__":
    # Small shapes consistent with the module (scaled-down input vocab).
    B, S, E = 3, 100, 128            # 300 tokens
    V_IN, V_TY = 512, 10             # input_index_size (scaled), type_index_size

    key = jax.random.PRNGKey(0)
    k1, k2, k3, k4 = jax.random.split(key, 4)

    # nn.Embedding ~ N(0,1), padding_idx=0 -> row 0 zeroed.
    in_emb = jax.random.normal(k1, (V_IN, E), dtype=jnp.float32).at[0].set(0.0)
    ty_emb = jax.random.normal(k2, (V_TY, E), dtype=jnp.float32).at[0].set(0.0)
    # nn.LayerNorm default init: weight = 1, bias = 0.
    gamma = jnp.ones((E,), dtype=jnp.float32)
    beta = jnp.zeros((E,), dtype=jnp.float32)

    input_ids = jax.random.randint(k3, (B, S), 0, V_IN, dtype=jnp.int32)
    type_ids = jax.random.randint(k4, (B, S), 0, V_TY, dtype=jnp.int32)

    ref = reference_forward(input_ids, type_ids, in_emb, ty_emb, gamma, beta)

    # (1) tile=128 -> 4 tiles on a (2, 2) grid: exercises the cross-step
    #     double-buffered gather, padding, and the parallel outer axis.
    out = codeemb_forward(input_ids, type_ids, in_emb, ty_emb, gamma, beta,
                          tile=128)
    out = jax.block_until_ready(out)
    assert out.shape == (B, S, E)
    assert jnp.allclose(out, ref, atol=1e-4, rtol=1e-4), "mismatch (tile=128)"

    # (2) default tile=512 (single-step, prime-only path) with bf16 output
    #     writeback (halved HBM store traffic).
    out_bf16 = codeemb_forward(input_ids, type_ids, in_emb, ty_emb, gamma,
                               beta, out_dtype=jnp.bfloat16)
    out_bf16 = jax.block_until_ready(out_bf16)
    assert out_bf16.shape == (B, S, E) and out_bf16.dtype == jnp.bfloat16
    assert jnp.allclose(out_bf16.astype(jnp.float32), ref,
                        atol=5e-2, rtol=5e-2), "mismatch (bf16 output)"

    print("KERNEL_OK")
</pallas_src>

<mosaic_0001>
module attributes {stable_mosaic.version = 11 : i64} {
  func.func @codeemb_kernel(%arg0: i32, %arg1: i32, %arg2: memref<512xi32, #tpu.memory_space<smem>>, %arg3: memref<128x1xi32, #tpu.memory_space<vmem>>, %arg4: memref<512x128xf32, #tpu.memory_space<any>>, %arg5: memref<10x128xf32, #tpu.memory_space<vmem>>, %arg6: memref<1x128xf32, #tpu.memory_space<vmem>>, %arg7: memref<1x128xf32, #tpu.memory_space<vmem>>, %arg8: memref<128x128xf32, #tpu.memory_space<vmem>>, %arg9: memref<2x128x128xf32, #tpu.memory_space<vmem>>, %arg10: memref<2x!tpu.dma_semaphore, #tpu.memory_space<semaphore_mem>>) attributes {dimension_semantics = [#tpu.dimension_semantics<parallel>, #tpu.dimension_semantics<arbitrary>], iteration_bounds = array<i64: 2, 2>, scalar_prefetch = 1 : i64, scratch_operands = 2 : i64, tpu.core_type = #tpu.core_type<tc>, window_params = [{transform_indices = @transform_0, window_bounds = array<i64: 128, 1>}, {}, {pipeline_mode = #tpu.pipeline_mode<synchronous>, transform_indices = @transform_2, window_bounds = array<i64: 10, 128>}, {pipeline_mode = #tpu.pipeline_mode<synchronous>, transform_indices = @transform_3, window_bounds = array<i64: 1, 128>}, {pipeline_mode = #tpu.pipeline_mode<synchronous>, transform_indices = @transform_4, window_bounds = array<i64: 1, 128>}, {transform_indices = @transform_5, window_bounds = array<i64: 128, 128>}]} {
    %c2_i32 = arith.constant 2 : i32
    %0 = arith.muli %arg0, %c2_i32 : i32
    %1 = arith.addi %0, %arg1 : i32
    %c2_i32_0 = arith.constant 2 : i32
    %c0_i32 = arith.constant 0 : i32
    %2 = arith.cmpi eq, %c2_i32_0, %c0_i32 : i32
    %c1_i32 = arith.constant 1 : i32
    %3 = arith.select %2, %c1_i32, %c2_i32_0 : i32
    %4 = arith.remsi %arg1, %3 : i32
    %c0_i32_1 = arith.constant 0 : i32
    %5 = arith.cmpi ne, %4, %c0_i32_1 : i32
    %c0_i32_2 = arith.constant 0 : i32
    %6 = arith.cmpi slt, %4, %c0_i32_2 : i32
    %c0_i32_3 = arith.constant 0 : i32
    %7 = arith.cmpi slt, %3, %c0_i32_3 : i32
    %8 = arith.xori %6, %7 : i1
    %9 = arith.andi %8, %5 : i1
    %10 = arith.addi %4, %3 : i32
    %11 = arith.select %9, %10, %4 : i32
    %c0_i32_4 = arith.constant 0 : i32
    %12 = arith.cmpi eq, %arg1, %c0_i32_4 : i32
    %13 = arith.extui %12 : i1 to i32
    %c0_i32_5 = arith.constant 0 : i32
    %14 = arith.cmpi ne, %13, %c0_i32_5 : i32
    scf.if %14 {
      %c128_i32 = arith.constant 128 : i32
      %59 = arith.muli %1, %c128_i32 : i32
      %c0_i32_29 = arith.constant 0 : i32
      %c16_i32 = arith.constant 16 : i32
      %60 = arith.addi %c0_i32_29, %c16_i32 : i32
      %c1_i32_30 = arith.constant 1 : i32
      scf.for %arg11 = %c0_i32_29 to %60 step %c1_i32_30  : i32 {
        %c1_i32_32 = arith.constant 1 : i32
        %61 = arith.muli %arg11, %c1_i32_32 : i32
        %c0_i32_33 = arith.constant 0 : i32
        %62 = arith.addi %c0_i32_33, %61 : i32
        %c8_i32 = arith.constant 8 : i32
        %63 = arith.muli %62, %c8_i32 : i32
        %64 = tpu.assume_multiple %63, 8 : i32
        %c0_i32_34 = arith.constant 0 : i32
        %65 = arith.addi %64, %c0_i32_34 : i32
        %66 = arith.addi %59, %65 : i32
        %67 = arith.index_cast %66 : i32 to index
        %68 = memref.load %arg2[%67] : memref<512xi32, #tpu.memory_space<smem>>
        %c0_i32_35 = arith.constant 0 : i32
        %c0_i32_36 = arith.constant 0 : i32
        %c0_i32_37 = arith.constant 0 : i32
        %69 = tpu.memref_slice %arg4[%68, %c0_i32_37] : memref<512x128xf32, #tpu.memory_space<any>> -> memref<1x128xf32, #tpu.memory_space<any>>
        %70 = tpu.memref_squeeze %69 : memref<1x128xf32, #tpu.memory_space<any>> -> memref<128xf32, #tpu.memory_space<any>>
        %c0_i32_38 = arith.constant 0 : i32
        %71 = tpu.memref_slice %arg9[%c0_i32_35, %65, %c0_i32_38] : memref<2x128x128xf32, #tpu.memory_space<vmem>> -> memref<1x1x128xf32, #tpu.memory_space<vmem>>
        %72 = tpu.memref_squeeze %71 : memref<1x1x128xf32, #tpu.memory_space<vmem>> -> memref<128xf32, #tpu.memory_space<vmem>>
        %73 = tpu.memref_slice %arg10[%c0_i32_36] : memref<2x!tpu.dma_semaphore, #tpu.memory_space<semaphore_mem>> -> memref<1x!tpu.dma_semaphore, #tpu.memory_space<semaphore_mem>>
        %74 = tpu.memref_squeeze %73 : memref<1x!tpu.dma_semaphore, #tpu.memory_space<semaphore_mem>> -> memref<!tpu.dma_semaphore, #tpu.memory_space<semaphore_mem>>
        tpu.enqueue_dma source(%70 : memref<128xf32, #tpu.memory_space<any>>) target(%72 : memref<128xf32, #tpu.memory_space<vmem>>) target_semaphore(%74 : memref<!tpu.dma_semaphore, #tpu.memory_space<semaphore_mem>>)
        %c1_i32_39 = arith.constant 1 : i32
        %75 = arith.addi %64, %c1_i32_39 : i32
        %76 = arith.addi %59, %75 : i32
        %77 = arith.index_cast %76 : i32 to index
        %78 = memref.load %arg2[%77] : memref<512xi32, #tpu.memory_space<smem>>
        %c0_i32_40 = arith.constant 0 : i32
        %c0_i32_41 = arith.constant 0 : i32
        %c0_i32_42 = arith.constant 0 : i32
        %79 = tpu.memref_slice %arg4[%78, %c0_i32_42] : memref<512x128xf32, #tpu.memory_space<any>> -> memref<1x128xf32, #tpu.memory_space<any>>
        %80 = tpu.memref_squeeze %79 : memref<1x128xf32, #tpu.memory_space<any>> -> memref<128xf32, #tpu.memory_space<any>>
        %c0_i32_43 = arith.constant 0 : i32
        %81 = tpu.memref_slice %arg9[%c0_i32_40, %75, %c0_i32_43] : memref<2x128x128xf32, #tpu.memory_space<vmem>> -> memref<1x1x128xf32, #tpu.memory_space<vmem>>
        %82 = tpu.memref_squeeze %81 : memref<1x1x128xf32, #tpu.memory_space<vmem>> -> memref<128xf32, #tpu.memory_space<vmem>>
        %83 = tpu.memref_slice %arg10[%c0_i32_41] : memref<2x!tpu.dma_semaphore, #tpu.memory_space<semaphore_mem>> -> memref<1x!tpu.dma_semaphore, #tpu.memory_space<semaphore_mem>>
        %84 = tpu.memref_squeeze %83 : memref<1x!tpu.dma_semaphore, #tpu.memory_space<semaphore_mem>> -> memref<!tpu.dma_semaphore, #tpu.memory_space<semaphore_mem>>
        tpu.enqueue_dma source(%80 : memref<128xf32, #tpu.memory_space<any>>) target(%82 : memref<128xf32, #tpu.memory_space<vmem>>) target_semaphore(%84 : memref<!tpu.dma_semaphore, #tpu.memory_space<semaphore_mem>>)
        %c2_i32_44 = arith.constant 2 : i32
        %85 = arith.addi %64, %c2_i32_44 : i32
        %86 = arith.addi %59, %85 : i32
        %87 = arith.index_cast %86 : i32 to index
        %88 = memref.load %arg2[%87] : memref<512xi32, #tpu.memory_space<smem>>
        %c0_i32_45 = arith.constant 0 : i32
        %c0_i32_46 = arith.constant 0 : i32
        %c0_i32_47 = arith.constant 0 : i32
        %89 = tpu.memref_slice %arg4[%88, %c0_i32_47] : memref<512x128xf32, #tpu.memory_space<any>> -> memref<1x128xf32, #tpu.memory_space<any>>
        %90 = tpu.memref_squeeze %89 : memref<1x128xf32, #tpu.memory_space<any>> -> memref<128xf32, #tpu.memory_space<any>>
        %c0_i32_48 = arith.constant 0 : i32
        %91 = tpu.memref_slice %arg9[%c0_i32_45, %85, %c0_i32_48] : memref<2x128x128xf32, #tpu.memory_space<vmem>> -> memref<1x1x128xf32, #tpu.memory_space<vmem>>
        %92 = tpu.memref_squeeze %91 : memref<1x1x128xf32, #tpu.memory_space<vmem>> -> memref<128xf32, #tpu.memory_space<vmem>>
        %93 = tpu.memref_slice %arg10[%c0_i32_46] : memref<2x!tpu.dma_semaphore, #tpu.memory_space<semaphore_mem>> -> memref<1x!tpu.dma_semaphore, #tpu.memory_space<semaphore_mem>>
        %94 = tpu.memref_squeeze %93 : memref<1x!tpu.dma_semaphore, #tpu.memory_space<semaphore_mem>> -> memref<!tpu.dma_semaphore, #tpu.memory_space<semaphore_mem>>
        tpu.enqueue_dma source(%90 : memref<128xf32, #tpu.memory_space<any>>) target(%92 : memref<128xf32, #tpu.memory_space<vmem>>) target_semaphore(%94 : memref<!tpu.dma_semaphore, #tpu.memory_space<semaphore_mem>>)
        %c3_i32 = arith.constant 3 : i32
        %95 = arith.addi %64, %c3_i32 : i32
        %96 = arith.addi %59, %95 : i32
        %97 = arith.index_cast %96 : i32 to index
        %98 = memref.load %arg2[%97] : memref<512xi32, #tpu.memory_space<smem>>
        %c0_i32_49 = arith.constant 0 : i32
        %c0_i32_50 = arith.constant 0 : i32
        %c0_i32_51 = arith.constant 0 : i32
        %99 = tpu.memref_slice %arg4[%98, %c0_i32_51] : memref<512x128xf32, #tpu.memory_space<any>> -> memref<1x128xf32, #tpu.memory_space<any>>
        %100 = tpu.memref_squeeze %99 : memref<1x128xf32, #tpu.memory_space<any>> -> memref<128xf32, #tpu.memory_space<any>>
        %c0_i32_52 = arith.constant 0 : i32
        %101 = tpu.memref_slice %arg9[%c0_i32_49, %95, %c0_i32_52] : memref<2x128x128xf32, #tpu.memory_space<vmem>> -> memref<1x1x128xf32, #tpu.memory_space<vmem>>
        %102 = tpu.memref_squeeze %101 : memref<1x1x128xf32, #tpu.memory_space<vmem>> -> memref<128xf32, #tpu.memory_space<vmem>>
        %103 = tpu.memref_slice %arg10[%c0_i32_50] : memref<2x!tpu.dma_semaphore, #tpu.memory_space<semaphore_mem>> -> memref<1x!tpu.dma_semaphore, #tpu.memory_space<semaphore_mem>>
        %104 = tpu.memref_squeeze %103 : memref<1x!tpu.dma_semaphore, #tpu.memory_space<semaphore_mem>> -> memref<!tpu.dma_semaphore, #tpu.memory_space<semaphore_mem>>
        tpu.enqueue_dma source(%100 : memref<128xf32, #tpu.memory_space<any>>) target(%102 : memref<128xf32, #tpu.memory_space<vmem>>) target_semaphore(%104 : memref<!tpu.dma_semaphore, #tpu.memory_space<semaphore_mem>>)
        %c4_i32 = arith.constant 4 : i32
        %105 = arith.addi %64, %c4_i32 : i32
        %106 = arith.addi %59, %105 : i32
        %107 = arith.index_cast %106 : i32 to index
        %108 = memref.load %arg2[%107] : memref<512xi32, #tpu.memory_space<smem>>
        %c0_i32_53 = arith.constant 0 : i32
        %c0_i32_54 = arith.constant 0 : i32
        %c0_i32_55 = arith.constant 0 : i32
        %109 = tpu.memref_slice %arg4[%108, %c0_i32_55] : memref<512x128xf32, #tpu.memory_space<any>> -> memref<1x128xf32, #tpu.memory_space<any>>
        %110 = tpu.memref_squeeze %109 : memref<1x128xf32, #tpu.memory_space<any>> -> memref<128xf32, #tpu.memory_space<any>>
        %c0_i32_56 = arith.constant 0 : i32
        %111 = tpu.memref_slice %arg9[%c0_i32_53, %105, %c0_i32_56] : memref<2x128x128xf32, #tpu.memory_space<vmem>> -> memref<1x1x128xf32, #tpu.memory_space<vmem>>
        %112 = tpu.memref_squeeze %111 : memref<1x1x128xf32, #tpu.memory_space<vmem>> -> memref<128xf32, #tpu.memory_space<vmem>>
        %113 = tpu.memref_slice %arg10[%c0_i32_54] : memref<2x!tpu.dma_semaphore, #tpu.memory_space<semaphore_mem>> -> memref<1x!tpu.dma_semaphore, #tpu.memory_space<semaphore_mem>>
        %114 = tpu.memref_squeeze %113 : memref<1x!tpu.dma_semaphore, #tpu.memory_space<semaphore_mem>> -> memref<!tpu.dma_semaphore, #tpu.memory_space<semaphore_mem>>
        tpu.enqueue_dma source(%110 : memref<128xf32, #tpu.memory_space<any>>) target(%112 : memref<128xf32, #tpu.memory_space<vmem>>) target_semaphore(%114 : memref<!tpu.dma_semaphore, #tpu.memory_space<semaphore_mem>>)
        %c5_i32 = arith.constant 5 : i32
        %115 = arith.addi %64, %c5_i32 : i32
        %116 = arith.addi %59, %115 : i32
        %117 = arith.index_cast %116 : i32 to index
        %118 = memref.load %arg2[%117] : memref<512xi32, #tpu.memory_space<smem>>
        %c0_i32_57 = arith.constant 0 : i32
        %c0_i32_58 = arith.constant 0 : i32
        %c0_i32_59 = arith.constant 0 : i32
        %119 = tpu.memref_slice %arg4[%118, %c0_i32_59] : memref<512x128xf32, #tpu.memory_space<any>> -> memref<1x128xf32, #tpu.memory_space<any>>
        %120 = tpu.memref_squeeze %119 : memref<1x128xf32, #tpu.memory_space<any>> -> memref<128xf32, #tpu.memory_space<any>>
        %c0_i32_60 = arith.constant 0 : i32
        %121 = tpu.memref_slice %arg9[%c0_i32_57, %115, %c0_i32_60] : memref<2x128x128xf32, #tpu.memory_space<vmem>> -> memref<1x1x128xf32, #tpu.memory_space<vmem>>
        %122 = tpu.memref_squeeze %121 : memref<1x1x128xf32, #tpu.memory_space<vmem>> -> memref<128xf32, #tpu.memory_space<vmem>>
        %123 = tpu.memref_slice %arg10[%c0_i32_58] : memref<2x!tpu.dma_semaphore, #tpu.memory_space<semaphore_mem>> -> memref<1x!tpu.dma_semaphore, #tpu.memory_space<semaphore_mem>>
        %124 = tpu.memref_squeeze %123 : memref<1x!tpu.dma_semaphore, #tpu.memory_space<semaphore_mem>> -> memref<!tpu.dma_semaphore, #tpu.memory_space<semaphore_mem>>
        tpu.enqueue_dma source(%120 : memref<128xf32, #tpu.memory_space<any>>) target(%122 : memref<128xf32, #tpu.memory_space<vmem>>) target_semaphore(%124 : memref<!tpu.dma_semaphore, #tpu.memory_space<semaphore_mem>>)
        %c6_i32 = arith.constant 6 : i32
        %125 = arith.addi %64, %c6_i32 : i32
        %126 = arith.addi %59, %125 : i32
        %127 = arith.index_cast %126 : i32 to index
        %128 = memref.load %arg2[%127] : memref<512xi32, #tpu.memory_space<smem>>
        %c0_i32_61 = arith.constant 0 : i32
        %c0_i32_62 = arith.constant 0 : i32
        %c0_i32_63 = arith.constant 0 : i32
        %129 = tpu.memref_slice %arg4[%128, %c0_i32_63] : memref<512x128xf32, #tpu.memory_space<any>> -> memref<1x128xf32, #tpu.memory_space<any>>
        %130 = tpu.memref_squeeze %129 : memref<1x128xf32, #tpu.memory_space<any>> -> memref<128xf32, #tpu.memory_space<any>>
        %c0_i32_64 = arith.constant 0 : i32
        %131 = tpu.memref_slice %arg9[%c0_i32_61, %125, %c0_i32_64] : memref<2x128x128xf32, #tpu.memory_space<vmem>> -> memref<1x1x128xf32, #tpu.memory_space<vmem>>
        %132 = tpu.memref_squeeze %131 : memref<1x1x128xf32, #tpu.memory_space<vmem>> -> memref<128xf32, #tpu.memory_space<vmem>>
        %133 = tpu.memref_slice %arg10[%c0_i32_62] : memref<2x!tpu.dma_semaphore, #tpu.memory_space<semaphore_mem>> -> memref<1x!tpu.dma_semaphore, #tpu.memory_space<semaphore_mem>>
        %134 = tpu.memref_squeeze %133 : memref<1x!tpu.dma_semaphore, #tpu.memory_space<semaphore_mem>> -> memref<!tpu.dma_semaphore, #tpu.memory_space<semaphore_mem>>
        tpu.enqueue_dma source(%130 : memref<128xf32, #tpu.memory_space<any>>) target(%132 : memref<128xf32, #tpu.memory_space<vmem>>) target_semaphore(%134 : memref<!tpu.dma_semaphore, #tpu.memory_space<semaphore_mem>>)
        %c7_i32 = arith.constant 7 : i32
        %135 = arith.addi %64, %c7_i32 : i32
        %136 = arith.addi %59, %135 : i32
        %137 = arith.index_cast %136 : i32 to index
        %138 = memref.load %arg2[%137] : memref<512xi32, #tpu.memory_space<smem>>
        %c0_i32_65 = arith.constant 0 : i32
        %c0_i32_66 = arith.constant 0 : i32
        %c0_i32_67 = arith.constant 0 : i32
        %139 = tpu.memref_slice %arg4[%138, %c0_i32_67] : memref<512x128xf32, #tpu.memory_space<any>> -> memref<1x128xf32, #tpu.memory_space<any>>
        %140 = tpu.memref_squeeze %139 : memref<1x128xf32, #tpu.memory_space<any>> -> memref<128xf32, #tpu.memory_space<any>>
        %c0_i32_68 = arith.constant 0 : i32
        %141 = tpu.memref_slice %arg9[%c0_i32_65, %135, %c0_i32_68] : memref<2x128x128xf32, #tpu.memory_space<vmem>> -> memref<1x1x128xf32, #tpu.memory_space<vmem>>
        %142 = tpu.memref_squeeze %141 : memref<1x1x128xf32, #tpu.memory_space<vmem>> -> memref<128xf32, #tpu.memory_space<vmem>>
        %143 = tpu.memref_slice %arg10[%c0_i32_66] : memref<2x!tpu.dma_semaphore, #tpu.memory_space<semaphore_mem>> -> memref<1x!tpu.dma_semaphore, #tpu.memory_space<semaphore_mem>>
        %144 = tpu.memref_squeeze %143 : memref<1x!tpu.dma_semaphore, #tpu.memory_space<semaphore_mem>> -> memref<!tpu.dma_semaphore, #tpu.memory_space<semaphore_mem>>
        tpu.enqueue_dma source(%140 : memref<128xf32, #tpu.memory_space<any>>) target(%142 : memref<128xf32, #tpu.memory_space<vmem>>) target_semaphore(%144 : memref<!tpu.dma_semaphore, #tpu.memory_space<semaphore_mem>>)
      }
      %c16_i32_31 = arith.constant 16 : i32
    } else {
    }
    %c1_i32_6 = arith.constant 1 : i32
    %15 = arith.addi %arg1, %c1_i32_6 : i32
    %c2_i32_7 = arith.constant 2 : i32
    %16 = arith.cmpi slt, %15, %c2_i32_7 : i32
    %17 = arith.extui %16 : i1 to i32
    %c0_i32_8 = arith.constant 0 : i32
    %18 = arith.cmpi ne, %17, %c0_i32_8 : i32
    scf.if %18 {
      %c1_i32_29 = arith.constant 1 : i32
      %59 = arith.addi %1, %c1_i32_29 : i32
      %c1_i32_30 = arith.constant 1 : i32
      %60 = arith.subi %c1_i32_30, %11 : i32
      %c128_i32 = arith.constant 128 : i32
      %61 = arith.muli %59, %c128_i32 : i32
      %c0_i32_31 = arith.constant 0 : i32
      %c16_i32 = arith.constant 16 : i32
      %62 = arith.addi %c0_i32_31, %c16_i32 : i32
      %c1_i32_32 = arith.constant 1 : i32
      scf.for %arg11 = %c0_i32_31 to %62 step %c1_i32_32  : i32 {
        %c1_i32_34 = arith.constant 1 : i32
        %63 = arith.muli %arg11, %c1_i32_34 : i32
        %c0_i32_35 = arith.constant 0 : i32
        %64 = arith.addi %c0_i32_35, %63 : i32
        %c8_i32 = arith.constant 8 : i32
        %65 = arith.muli %64, %c8_i32 : i32
        %66 = tpu.assume_multiple %65, 8 : i32
        %c0_i32_36 = arith.constant 0 : i32
        %67 = arith.addi %66, %c0_i32_36 : i32
        %68 = arith.addi %61, %67 : i32
        %69 = arith.index_cast %68 : i32 to index
        %70 = memref.load %arg2[%69] : memref<512xi32, #tpu.memory_space<smem>>
        %c0_i32_37 = arith.constant 0 : i32
        %71 = tpu.memref_slice %arg4[%70, %c0_i32_37] : memref<512x128xf32, #tpu.memory_space<any>> -> memref<1x128xf32, #tpu.memory_space<any>>
        %72 = tpu.memref_squeeze %71 : memref<1x128xf32, #tpu.memory_space<any>> -> memref<128xf32, #tpu.memory_space<any>>
        %c0_i32_38 = arith.constant 0 : i32
        %73 = tpu.memref_slice %arg9[%60, %67, %c0_i32_38] : memref<2x128x128xf32, #tpu.memory_space<vmem>> -> memref<1x1x128xf32, #tpu.memory_space<vmem>>
        %74 = tpu.memref_squeeze %73 : memref<1x1x128xf32, #tpu.memory_space<vmem>> -> memref<128xf32, #tpu.memory_space<vmem>>
        %75 = tpu.memref_slice %arg10[%60] : memref<2x!tpu.dma_semaphore, #tpu.memory_space<semaphore_mem>> -> memref<1x!tpu.dma_semaphore, #tpu.memory_space<semaphore_mem>>
        %76 = tpu.memref_squeeze %75 : memref<1x!tpu.dma_semaphore, #tpu.memory_space<semaphore_mem>> -> memref<!tpu.dma_semaphore, #tpu.memory_space<semaphore_mem>>
        tpu.enqueue_dma source(%72 : memref<128xf32, #tpu.memory_space<any>>) target(%74 : memref<128xf32, #tpu.memory_space<vmem>>) target_semaphore(%76 : memref<!tpu.dma_semaphore, #tpu.memory_space<semaphore_mem>>)
        %c1_i32_39 = arith.constant 1 : i32
        %77 = arith.addi %66, %c1_i32_39 : i32
        %78 = arith.addi %61, %77 : i32
        %79 = arith.index_cast %78 : i32 to index
        %80 = memref.load %arg2[%79] : memref<512xi32, #tpu.memory_space<smem>>
        %c0_i32_40 = arith.constant 0 : i32
        %81 = tpu.memref_slice %arg4[%80, %c0_i32_40] : memref<512x128xf32, #tpu.memory_space<any>> -> memref<1x128xf32, #tpu.memory_space<any>>
        %82 = tpu.memref_squeeze %81 : memref<1x128xf32, #tpu.memory_space<any>> -> memref<128xf32, #tpu.memory_space<any>>
        %c0_i32_41 = arith.constant 0 : i32
        %83 = tpu.memref_slice %arg9[%60, %77, %c0_i32_41] : memref<2x128x128xf32, #tpu.memory_space<vmem>> -> memref<1x1x128xf32, #tpu.memory_space<vmem>>
        %84 = tpu.memref_squeeze %83 : memref<1x1x128xf32, #tpu.memory_space<vmem>> -> memref<128xf32, #tpu.memory_space<vmem>>
        %85 = tpu.memref_slice %arg10[%60] : memref<2x!tpu.dma_semaphore, #tpu.memory_space<semaphore_mem>> -> memref<1x!tpu.dma_semaphore, #tpu.memory_space<semaphore_mem>>
        %86 = tpu.memref_squeeze %85 : memref<1x!tpu.dma_semaphore, #tpu.memory_space<semaphore_mem>> -> memref<!tpu.dma_semaphore, #tpu.memory_space<semaphore_mem>>
        tpu.enqueue_dma source(%82 : memref<128xf32, #tpu.memory_space<any>>) target(%84 : memref<128xf32, #tpu.memory_space<vmem>>) target_semaphore(%86 : memref<!tpu.dma_semaphore, #tpu.memory_space<semaphore_mem>>)
        %c2_i32_42 = arith.constant 2 : i32
        %87 = arith.addi %66, %c2_i32_42 : i32
        %88 = arith.addi %61, %87 : i32
        %89 = arith.index_cast %88 : i32 to index
        %90 = memref.load %arg2[%89] : memref<512xi32, #tpu.memory_space<smem>>
        %c0_i32_43 = arith.constant 0 : i32
        %91 = tpu.memref_slice %arg4[%90, %c0_i32_43] : memref<512x128xf32, #tpu.memory_space<any>> -> memref<1x128xf32, #tpu.memory_space<any>>
        %92 = tpu.memref_squeeze %91 : memref<1x128xf32, #tpu.memory_space<any>> -> memref<128xf32, #tpu.memory_space<any>>
        %c0_i32_44 = arith.constant 0 : i32
        %93 = tpu.memref_slice %arg9[%60, %87, %c0_i32_44] : memref<2x128x128xf32, #tpu.memory_space<vmem>> -> memref<1x1x128xf32, #tpu.memory_space<vmem>>
        %94 = tpu.memref_squeeze %93 : memref<1x1x128xf32, #tpu.memory_space<vmem>> -> memref<128xf32, #tpu.memory_space<vmem>>
        %95 = tpu.memref_slice %arg10[%60] : memref<2x!tpu.dma_semaphore, #tpu.memory_space<semaphore_mem>> -> memref<1x!tpu.dma_semaphore, #tpu.memory_space<semaphore_mem>>
        %96 = tpu.memref_squeeze %95 : memref<1x!tpu.dma_semaphore, #tpu.memory_space<semaphore_mem>> -> memref<!tpu.dma_semaphore, #tpu.memory_space<semaphore_mem>>
        tpu.enqueue_dma source(%92 : memref<128xf32, #tpu.memory_space<any>>) target(%94 : memref<128xf32, #tpu.memory_space<vmem>>) target_semaphore(%96 : memref<!tpu.dma_semaphore, #tpu.memory_space<semaphore_mem>>)
        %c3_i32 = arith.constant 3 : i32
        %97 = arith.addi %66, %c3_i32 : i32
        %98 = arith.addi %61, %97 : i32
        %99 = arith.index_cast %98 : i32 to index
        %100 = memref.load %arg2[%99] : memref<512xi32, #tpu.memory_space<smem>>
        %c0_i32_45 = arith.constant 0 : i32
        %101 = tpu.memref_slice %arg4[%100, %c0_i32_45] : memref<512x128xf32, #tpu.memory_space<any>> -> memref<1x128xf32, #tpu.memory_space<any>>
        %102 = tpu.memref_squeeze %101 : memref<1x128xf32, #tpu.memory_space<any>> -> memref<128xf32, #tpu.memory_space<any>>
        %c0_i32_46 = arith.constant 0 : i32
        %103 = tpu.memref_slice %arg9[%60, %97, %c0_i32_46] : memref<2x128x128xf32, #tpu.memory_space<vmem>> -> memref<1x1x128xf32, #tpu.memory_space<vmem>>
        %104 = tpu.memref_squeeze %103 : memref<1x1x128xf32, #tpu.memory_space<vmem>> -> memref<128xf32, #tpu.memory_space<vmem>>
        %105 = tpu.memref_slice %arg10[%60] : memref<2x!tpu.dma_semaphore, #tpu.memory_space<semaphore_mem>> -> memref<1x!tpu.dma_semaphore, #tpu.memory_space<semaphore_mem>>
        %106 = tpu.memref_squeeze %105 : memref<1x!tpu.dma_semaphore, #tpu.memory_space<semaphore_mem>> -> memref<!tpu.dma_semaphore, #tpu.memory_space<semaphore_mem>>
        tpu.enqueue_dma source(%102 : memref<128xf32, #tpu.memory_space<any>>) target(%104 : memref<128xf32, #tpu.memory_space<vmem>>) target_semaphore(%106 : memref<!tpu.dma_semaphore, #tpu.memory_space<semaphore_mem>>)
        %c4_i32 = arith.constant 4 : i32
        %107 = arith.addi %66, %c4_i32 : i32
        %108 = arith.addi %61, %107 : i32
        %109 = arith.index_cast %108 : i32 to index
        %110 = memref.load %arg2[%109] : memref<512xi32, #tpu.memory_space<smem>>
        %c0_i32_47 = arith.constant 0 : i32
        %111 = tpu.memref_slice %arg4[%110, %c0_i32_47] : memref<512x128xf32, #tpu.memory_space<any>> -> memref<1x128xf32, #tpu.memory_space<any>>
        %112 = tpu.memref_squeeze %111 : memref<1x128xf32, #tpu.memory_space<any>> -> memref<128xf32, #tpu.memory_space<any>>
        %c0_i32_48 = arith.constant 0 : i32
        %113 = tpu.memref_slice %arg9[%60, %107, %c0_i32_48] : memref<2x128x128xf32, #tpu.memory_space<vmem>> -> memref<1x1x128xf32, #tpu.memory_space<vmem>>
        %114 = tpu.memref_squeeze %113 : memref<1x1x128xf32, #tpu.memory_space<vmem>> -> memref<128xf32, #tpu.memory_space<vmem>>
        %115 = tpu.memref_slice %arg10[%60] : memref<2x!tpu.dma_semaphore, #tpu.memory_space<semaphore_mem>> -> memref<1x!tpu.dma_semaphore, #tpu.memory_space<semaphore_mem>>
        %116 = tpu.memref_squeeze %115 : memref<1x!tpu.dma_semaphore, #tpu.memory_space<semaphore_mem>> -> memref<!tpu.dma_semaphore, #tpu.memory_space<semaphore_mem>>
        tpu.enqueue_dma source(%112 : memref<128xf32, #tpu.memory_space<any>>) target(%114 : memref<128xf32, #tpu.memory_space<vmem>>) target_semaphore(%116 : memref<!tpu.dma_semaphore, #tpu.memory_space<semaphore_mem>>)
        %c5_i32 = arith.constant 5 : i32
        %117 = arith.addi %66, %c5_i32 : i32
        %118 = arith.addi %61, %117 : i32
        %119 = arith.index_cast %118 : i32 to index
        %120 = memref.load %arg2[%119] : memref<512xi32, #tpu.memory_space<smem>>
        %c0_i32_49 = arith.constant 0 : i32
        %121 = tpu.memref_slice %arg4[%120, %c0_i32_49] : memref<512x128xf32, #tpu.memory_space<any>> -> memref<1x128xf32, #tpu.memory_space<any>>
        %122 = tpu.memref_squeeze %121 : memref<1x128xf32, #tpu.memory_space<any>> -> memref<128xf32, #tpu.memory_space<any>>
        %c0_i32_50 = arith.constant 0 : i32
        %123 = tpu.memref_slice %arg9[%60, %117, %c0_i32_50] : memref<2x128x128xf32, #tpu.memory_space<vmem>> -> memref<1x1x128xf32, #tpu.memory_space<vmem>>
        %124 = tpu.memref_squeeze %123 : memref<1x1x128xf32, #tpu.memory_space<vmem>> -> memref<128xf32, #tpu.memory_space<vmem>>
        %125 = tpu.memref_slice %arg10[%60] : memref<2x!tpu.dma_semaphore, #tpu.memory_space<semaphore_mem>> -> memref<1x!tpu.dma_semaphore, #tpu.memory_space<semaphore_mem>>
        %126 = tpu.memref_squeeze %125 : memref<1x!tpu.dma_semaphore, #tpu.memory_space<semaphore_mem>> -> memref<!tpu.dma_semaphore, #tpu.memory_space<semaphore_mem>>
        tpu.enqueue_dma source(%122 : memref<128xf32, #tpu.memory_space<any>>) target(%124 : memref<128xf32, #tpu.memory_space<vmem>>) target_semaphore(%126 : memref<!tpu.dma_semaphore, #tpu.memory_space<semaphore_mem>>)
        %c6_i32 = arith.constant 6 : i32
        %127 = arith.addi %66, %c6_i32 : i32
        %128 = arith.addi %61, %127 : i32
        %129 = arith.index_cast %128 : i32 to index
        %130 = memref.load %arg2[%129] : memref<512xi32, #tpu.memory_space<smem>>
        %c0_i32_51 = arith.constant 0 : i32
        %131 = tpu.memref_slice %arg4[%130, %c0_i32_51] : memref<512x128xf32, #tpu.memory_space<any>> -> memref<1x128xf32, #tpu.memory_space<any>>
        %132 = tpu.memref_squeeze %131 : memref<1x128xf32, #tpu.memory_space<any>> -> memref<128xf32, #tpu.memory_space<any>>
        %c0_i32_52 = arith.constant 0 : i32
        %133 = tpu.memref_slice %arg9[%60, %127, %c0_i32_52] : memref<2x128x128xf32, #tpu.memory_space<vmem>> -> memref<1x1x128xf32, #tpu.memory_space<vmem>>
        %134 = tpu.memref_squeeze %133 : memref<1x1x128xf32, #tpu.memory_space<vmem>> -> memref<128xf32, #tpu.memory_space<vmem>>
        %135 = tpu.memref_slice %arg10[%60] : memref<2x!tpu.dma_semaphore, #tpu.memory_space<semaphore_mem>> -> memref<1x!tpu.dma_semaphore, #tpu.memory_space<semaphore_mem>>
        %136 = tpu.memref_squeeze %135 : memref<1x!tpu.dma_semaphore, #tpu.memory_space<semaphore_mem>> -> memref<!tpu.dma_semaphore, #tpu.memory_space<semaphore_mem>>
        tpu.enqueue_dma source(%132 : memref<128xf32, #tpu.memory_space<any>>) target(%134 : memref<128xf32, #tpu.memory_space<vmem>>) target_semaphore(%136 : memref<!tpu.dma_semaphore, #tpu.memory_space<semaphore_mem>>)
        %c7_i32 = arith.constant 7 : i32
        %137 = arith.addi %66, %c7_i32 : i32
        %138 = arith.addi %61, %137 : i32
        %139 = arith.index_cast %138 : i32 to index
        %140 = memref.load %arg2[%139] : memref<512xi32, #tpu.memory_space<smem>>
        %c0_i32_53 = arith.constant 0 : i32
        %141 = tpu.memref_slice %arg4[%140, %c0_i32_53] : memref<512x128xf32, #tpu.memory_space<any>> -> memref<1x128xf32, #tpu.memory_space<any>>
        %142 = tpu.memref_squeeze %141 : memref<1x128xf32, #tpu.memory_space<any>> -> memref<128xf32, #tpu.memory_space<any>>
        %c0_i32_54 = arith.constant 0 : i32
        %143 = tpu.memref_slice %arg9[%60, %137, %c0_i32_54] : memref<2x128x128xf32, #tpu.memory_space<vmem>> -> memref<1x1x128xf32, #tpu.memory_space<vmem>>
        %144 = tpu.memref_squeeze %143 : memref<1x1x128xf32, #tpu.memory_space<vmem>> -> memref<128xf32, #tpu.memory_space<vmem>>
        %145 = tpu.memref_slice %arg10[%60] : memref<2x!tpu.dma_semaphore, #tpu.memory_space<semaphore_mem>> -> memref<1x!tpu.dma_semaphore, #tpu.memory_space<semaphore_mem>>
        %146 = tpu.memref_squeeze %145 : memref<1x!tpu.dma_semaphore, #tpu.memory_space<semaphore_mem>> -> memref<!tpu.dma_semaphore, #tpu.memory_space<semaphore_mem>>
        tpu.enqueue_dma source(%142 : memref<128xf32, #tpu.memory_space<any>>) target(%144 : memref<128xf32, #tpu.memory_space<vmem>>) target_semaphore(%146 : memref<!tpu.dma_semaphore, #tpu.memory_space<semaphore_mem>>)
      }
      %c16_i32_33 = arith.constant 16 : i32
    } else {
    }
    %c0 = arith.constant 0 : index
    %c0_9 = arith.constant 0 : index
    %19 = vector.load %arg3[%c0, %c0_9] : memref<128x1xi32, #tpu.memory_space<vmem>>, vector<128x1xi32>
    %20 = tpu.iota {dimensions = array<i32: 1>} : vector<128x10xi32>
    %21 = vector.broadcast %19 : vector<128x1xi32> to vector<128x10xi32>
    %22 = arith.cmpi eq, %21, %20 : vector<128x10xi32>
    %23 = arith.extui %22 : vector<128x10xi1> to vector<128x10xi32>
    %24 = arith.sitofp %23 : vector<128x10xi32> to vector<128x10xf32>
    %c0_10 = arith.constant 0 : index
    %c0_11 = arith.constant 0 : index
    %25 = vector.load %arg5[%c0_10, %c0_11] : memref<10x128xf32, #tpu.memory_space<vmem>>, vector<10x128xf32>
    %cst = arith.constant dense<0.000000e+00> : vector<128x128xf32>
    %26 = tpu.matmul %24, %25, %cst {dimension_numbers = #tpu.dot_dimension_numbers<[1], [0], [0], [1], [0, 0, 1, 1], [], []>} : vector<128x10xf32>, vector<10x128xf32>, vector<128x128xf32> -> vector<128x128xf32>
    %c0_i32_12 = arith.constant 0 : i32
    %c0_i32_13 = arith.constant 0 : i32
    %27 = tpu.memref_slice %arg4[%c0_i32_12, %c0_i32_13] : memref<512x128xf32, #tpu.memory_space<any>> -> memref<128x128xf32, #tpu.memory_space<any>>
    %c0_i32_14 = arith.constant 0 : i32
    %c0_i32_15 = arith.constant 0 : i32
    %28 = tpu.memref_slice %arg9[%11, %c0_i32_14, %c0_i32_15] : memref<2x128x128xf32, #tpu.memory_space<vmem>> -> memref<1x128x128xf32, #tpu.memory_space<vmem>>
    %29 = tpu.memref_squeeze %28 : memref<1x128x128xf32, #tpu.memory_space<vmem>> -> memref<128x128xf32, #tpu.memory_space<vmem>>
    %30 = tpu.memref_slice %arg10[%11] : memref<2x!tpu.dma_semaphore, #tpu.memory_space<semaphore_mem>> -> memref<1x!tpu.dma_semaphore, #tpu.memory_space<semaphore_mem>>
    %31 = tpu.memref_squeeze %30 : memref<1x!tpu.dma_semaphore, #tpu.memory_space<semaphore_mem>> -> memref<!tpu.dma_semaphore, #tpu.memory_space<semaphore_mem>>
    tpu.wait_dma2 semaphore(%31 : memref<!tpu.dma_semaphore, #tpu.memory_space<semaphore_mem>>) src(%27 : memref<128x128xf32, #tpu.memory_space<any>>) dst(%29 : memref<128x128xf32, #tpu.memory_space<vmem>>)
    %32 = arith.index_cast %11 : i32 to index
    %c0_16 = arith.constant 0 : index
    %c0_17 = arith.constant 0 : index
    %33 = vector.load %arg9[%32, %c0_16, %c0_17] : memref<2x128x128xf32, #tpu.memory_space<vmem>>, vector<1x128x128xf32>
    %34 = vector.shape_cast %33 : vector<1x128x128xf32> to vector<128x128xf32>
    %35 = arith.addf %34, %26 : vector<128x128xf32>
    %cst_18 = arith.constant dense<0.000000e+00> : vector<128xf32>
    %36 = vector.multi_reduction <add>, %35, %cst_18 [1] : vector<128x128xf32> to vector<128xf32>
    %37 = vector.shape_cast %36 : vector<128xf32> to vector<128x1xf32>
    %cst_19 = arith.constant 1.280000e+02 : f32
    %38 = vector.broadcast %cst_19 : f32 to vector<128x1xf32>
    %39 = arith.divf %37, %38 : vector<128x1xf32>
    %40 = vector.broadcast %39 : vector<128x1xf32> to vector<128x128xf32>
    %41 = arith.subf %35, %40 : vector<128x128xf32>
    %42 = arith.mulf %41, %41 : vector<128x128xf32>
    %cst_20 = arith.constant dense<0.000000e+00> : vector<128xf32>
    %43 = vector.multi_reduction <add>, %42, %cst_20 [1] : vector<128x128xf32> to vector<128xf32>
    %44 = vector.shape_cast %43 : vector<128xf32> to vector<128x1xf32>
    %cst_21 = arith.constant 1.280000e+02 : f32
    %45 = vector.broadcast %cst_21 : f32 to vector<128x1xf32>
    %46 = arith.divf %44, %45 : vector<128x1xf32>
    %cst_22 = arith.constant 9.99999996E-13 : f32
    %47 = vector.broadcast %cst_22 : f32 to vector<128x1xf32>
    %48 = arith.addf %46, %47 : vector<128x1xf32>
    %49 = math.rsqrt %48 : vector<128x1xf32>
    %50 = vector.broadcast %49 : vector<128x1xf32> to vector<128x128xf32>
    %51 = arith.mulf %41, %50 : vector<128x128xf32>
    %c0_23 = arith.constant 0 : index
    %c0_24 = arith.constant 0 : index
    %52 = vector.load %arg6[%c0_23, %c0_24] : memref<1x128xf32, #tpu.memory_space<vmem>>, vector<1x128xf32>
    %53 = vector.broadcast %52 : vector<1x128xf32> to vector<128x128xf32>
    %54 = arith.mulf %51, %53 : vector<128x128xf32>
    %c0_25 = arith.constant 0 : index
    %c0_26 = arith.constant 0 : index
    %55 = vector.load %arg7[%c0_25, %c0_26] : memref<1x128xf32, #tpu.memory_space<vmem>>, vector<1x128xf32>
    %56 = vector.broadcast %55 : vector<1x128xf32> to vector<128x128xf32>
    %57 = arith.addf %54, %56 : vector<128x128xf32>
    %c0_27 = arith.constant 0 : index
    %c0_28 = arith.constant 0 : index
    %58 = vector.load %arg8[%c0_27, %c0_28] : memref<128x128xf32, #tpu.memory_space<vmem>>, vector<128x128xf32>
    tpu.vector_store %arg8[%c0_27, %c0_28], %57 {strides = array<i32>} : memref<128x128xf32, #tpu.memory_space<vmem>>, vector<128x128xf32>,
    return
  }
  func.func @transform_0(%arg0: i32, %arg1: i32, %arg2: memref<512xi32, #tpu.memory_space<smem>>) -> (i32, i32) {
    %c2_i32 = arith.constant 2 : i32
    %0 = arith.muli %arg0, %c2_i32 : i32
    %1 = arith.addi %0, %arg1 : i32
    %c0_i32 = arith.constant 0 : i32
    %c0_i32_0 = arith.constant 0 : i32
    return %1, %c0_i32 : i32, i32
  }
  func.func @transform_2(%arg0: i32, %arg1: i32, %arg2: memref<512xi32, #tpu.memory_space<smem>>) -> (i32, i32) {
    %c0_i32 = arith.constant 0 : i32
    %c0_i32_0 = arith.constant 0 : i32
    %c0_i32_1 = arith.constant 0 : i32
    return %c0_i32, %c0_i32_0 : i32, i32
  }
  func.func @transform_3(%arg0: i32, %arg1: i32, %arg2: memref<512xi32, #tpu.memory_space<smem>>) -> (i32, i32) {
    %c0_i32 = arith.constant 0 : i32
    %c0_i32_0 = arith.constant 0 : i32
    %c0_i32_1 = arith.constant 0 : i32
    return %c0_i32, %c0_i32_0 : i32, i32
  }
  func.func @transform_4(%arg0: i32, %arg1: i32, %arg2: memref<512xi32, #tpu.memory_space<smem>>) -> (i32, i32) {
    %c0_i32 = arith.constant 0 : i32
    %c0_i32_0 = arith.constant 0 : i32
    %c0_i32_1 = arith.constant 0 : i32
    return %c0_i32, %c0_i32_0 : i32, i32
  }
  func.func @transform_5(%arg0: i32, %arg1: i32, %arg2: memref<512xi32, #tpu.memory_space<smem>>) -> (i32, i32) {
    %c2_i32 = arith.constant 2 : i32
    %0 = arith.muli %arg0, %c2_i32 : i32
    %1 = arith.addi %0, %arg1 : i32
    %c0_i32 = arith.constant 0 : i32
    %c0_i32_0 = arith.constant 0 : i32
    return %1, %c0_i32 : i32, i32
  }
}

</mosaic_0001>

<bundles_post_ra>
// kernel: tpu_custom_call.1
= control target key start
LH: loop header
LB: loop body
LE: loop exit
PB: predicated region body
PF: predicated region fallthrough
CT: control target
= control target key end

     0   :  { %s3159_s0 = inlined_call_operand.vmem [shape: s32[512], index: 0, kind: input, shape index: {}]   ;;  %s3160_s1 = inlined_call_operand.vmem [shape: s32[512,1], index: 1, kind: input, shape index: {}]   ;;  %s3161_s2 = inlined_call_operand.vmem [shape: f32[512,128], index: 2, kind: input, shape index: {}]   ;;  %s3162_s3 = inlined_call_operand.hbm [shape: f32[10,128], index: 3, kind: input, shape index: {}]   ;;  %s3163_s4 = inlined_call_operand.vmem [shape: f32[1,128], index: 4, kind: input, shape index: {}]   ;;  %s3164_s5 = inlined_call_operand.vmem [shape: f32[1,128], index: 5, kind: input, shape index: {}]   ;;  %s3165_s6 = inlined_call_operand.hbm [shape: f32[512,128], index: 6, kind: output, shape index: {}]  }
   0x1   :  { %3175 = sst [smem:[#allocation35_spill]] %s3160_s1  ;;  %s11_s23 = sshll.u32 %s3159_s0, 4  ;;  %s12_s23 = int_to_ptr.vmem [resolvable:$true] %s11_s23 }
   0x2   :  { %3176 = sst [smem:[#allocation36_spill]] %s3162_s3  ;;  %s2376_s24 = scalar_lea.vmem %s12_s23, 64 }
   0x3   :  { %p2377_p0 = scmp.ne.s32.totalorder %s12_s23, %s2376_s24  ;;  %p2381_p1 = scmp.lt.s32.totalorder %s12_s23, %s12_s23 }
   0x4   :  { %p2382_p2 = scmp.lt.s32.totalorder %s2376_s24, %s2376_s24 }
   0x6   :  { %p2383_p3 = por %p2382_p2, %p2381_p1 }
   0x8   :  { %p2384_p4 = pnand %p2383_p3, %p2377_p0 }
   0xa   :  { %2387 = shalt.err (!%p2384_p4)  }
   0xb   :  { %s2536_s25 = smov [#allocation5]  }
   0xc   :  { %14 = dma.vmem_to_smem %s12_s23, 64, %s2536_s25, [#allocation4] }
   0xd   :  { %2484 = dma.done.wait [#allocation4], 64 }
   0xe   :  { %2485 = vsyncadd [#allocation4], 4294967232 }
   0xf   :  { %16 = sfence }
  0x10   :  { %17 = vsyncpa [#allocation7], 0 }
  0x11   :  { %18 = vsyncpa [#allocation8], 0 }
  0x12   :  { %20 = vsyncpa [#allocation8 + $0x1], 0  ;;  %s2584_s26 = smov 0   ;;  %s2586_s27 = smov 0  }
  0x13   :  { %s2588_s0 = smov 0   ;;  %s2590_s28 = smov 0  }
  0x14   :  { %s2592_s29 = smov 0   ;;  %s2594_s30 = smov 0  }
  0x15   :  { %s2596_s7 = smov 0   ;;  %s2598_s8 = smov 0  }
  0x16 LB: > { %3177 = sst [smem:[#allocation30_spill]] %s2518_s30  ;;  %s2060_s9 = sadd.s32 4294967295, %s2526_s8   ;;  %s2526_s8 = sphi %s2598_s8, %s26_s8   ;;  %s2522_s7 = sphi %s2596_s7, %s3199_s7   ;;  %s2518_s30 = sphi %s2594_s30, %s3198_s30   ;;  %s2514_s29 = sphi %s2592_s29, %s3197_s29   ;;  %s2510_s28 = sphi %s2590_s28, %s3196_s28   ;;  %s2506_s0 = sphi %s2588_s0, %s3202_s0   ;;  %s2502_s27 = sphi %s2586_s27, %s3201_s27   ;;  %s2498_s26 = sphi %s2584_s26, %s3200_s26  }
  0x17   : > { %3178 = sst [smem:[#allocation31_spill]] %s2522_s7  ;;  %s2061_s10 = sadd.s32 4294967294, %s2526_s8  }
  0x18   : > { %s35_s11 = sadd.s32 1, %s2518_s30  ;;  %s38_s12 = sadd.s32 1, %s2522_s7 }
  0x19   : > { %p36_p5 = scmp.ge.s32.totalorder %s35_s11, 2  ;;  %s2064_s13 = sshll.u32 %s2522_s7, 1 }
  0x1a   : > { %s136_s14 = sadd.s32 %s2518_s30, %s2064_s13  ;;  %s142_s15 = sadd.s32 1, %s2506_s0 }
  0x1b   : > { %s3204_s11 = smov (%p36_p5, %s35_s11), 0  ;;  %s3206_s12 = smov (!%p36_p5, %s38_s12), %s2522_s7 }
  0x1c   : > { %3179 = sst [smem:[#allocation32_spill]] %s3204_s11  ;;  %p152_p6 = scmp.ne.s32.totalorder %s2506_s0, %s2502_s27 }
  0x1d   : > { %p153_p7 = scmp.eq.s32.totalorder %s2060_s9, 3  ;;  %p40_p8 = scmp.ge.s32.totalorder %s3206_s12, 2 }
  0x1e   : > { %p158_p9 = scmp.ne.s32.totalorder %s2502_s27, %s2498_s26  ;;  %p159_p11 = scmp.eq.s32.totalorder %s2061_s10, 3 }
  0x1f   : > { %p2638_p10 = por %p153_p7, %p152_p6  ;;  %s3208_s12 = smov (%p40_p8, %s3206_s12), 0 }
  0x20   : > { %3181 = sst [smem:[#allocation33_spill]] %s3208_s12  ;;  %p2644_p12 = por %p159_p11, %p158_p9 }
  0x21   : > { %s3180_s16 = scalar_select %p2638_p10, 1, 0 }
  0x22   : > { %s3182_s17 = scalar_select %p2644_p12, 1, 0 }
  0x23   : > { %p2066_p13 = scmp.ge.s32.totalorder %s2526_s8, 1  ;;  %s2065_s18 = sshll.u32 %s3208_s12, 1 }
  0x24   : > { %p166_p0 = scmp.lt.s32.totalorder %s2526_s8, 5  ;;  %s138_s19 = sadd.s32 %s2065_s18, %s3204_s11 }
  0x25   : > { %s139_s20 = ssub.s32 %s136_s14, %s138_s19  ;;  %p2656_p3 = scmp.eq.s32.totalorder %s2060_s9, 0 }
  0x26   : > { %p2652_p1 = pnand %p2066_p13, %p166_p0  ;;  %p140_p2 = scmp.eq.s32.totalorder %s139_s20, 0 }
  0x27   : > { %s3184_s22 = scalar_select %p2656_p3, 1, 0 }
  0x28   : > { %s3183_s21 = scalar_select %p2652_p1, 1, 0 }
  0x29   : > { %p2242_p4 = pneg %p2652_p1  ;;  %s2537_s24 = smov [#allocation6]  }
  0x2a   : > { %s2663_s23 = scalar_select %p140_p2, %s2506_s0, %s142_s15  }
  0x2b   : > { %s178_s25 = sshll.u32 %s2537_s24, 4  ;;  %p2667_p5 = pnand %p2656_p3, %p2242_p4  ;;  %s179_s25 = int_to_ptr.vmem [resolvable:$true] %s178_s25 }
  0x2c   : > { %3185 = sst [smem:[#allocation34_spill]] %s2663_s23  ;;  %s3187_s3 = sld [smem:[#allocation36_spill]] }
  0x2d   : > { %p2390_p7 = pneg %p2667_p5 }
  0x32   : > { %s2388_s9 = scalar_lea.hbm %s3187_s3, 256 }
  0x33   : > { %p2389_p6 = scmp.ne.s32.totalorder %s3187_s3, %s2388_s9  ;;  %p2395_p11 = scmp.lt.u32.totalorder %s2388_s9, %s3187_s3 }
  0x35   : > { %p2391_p8 = pnand %p2390_p7, %p2389_p6 }
  0x37   : > { %p2392_p9 = pneg %p2391_p8 }
  0x39   : > { %p2397_p13 = pnand %p2395_p11, %p2392_p9 }
  0x3b   : > { %2400 = shalt.err (!%p2397_p13)
}
  0x3c   : > { %s2401_s24 = scalar_lea.vmem %s179_s25, 256  ;;  %p2409_p12 = scmp.lt.s32.totalorder %s179_s25, %s179_s25 }
  0x3d   : > { %p2402_p0 = scmp.ne.s32.totalorder %s179_s25, %s2401_s24  ;;  %p2410_p10 = scmp.lt.s32.totalorder %s2401_s24, %s2401_s24 }
  0x3f   : > { %p2404_p2 = pnand %p2402_p0, %p2390_p7  ;;  %p2411_p3 = por %p2410_p10, %p2409_p12 }
  0x41   : > { %p2405_p4 = pneg %p2404_p2 }
  0x43   : > { %p2412_p1 = pnand %p2411_p3, %p2405_p4 }
  0x45   : > { %2415 = shalt.err (!%p2412_p1)
}
  0x46   : > { %s2538_s13 = smov 128   ;;  %s2539_s14 = smov 8  }
  0x47   : > { %2245 = dma.hbm_to_vmem [thread:$0]  (!%p2667_p5), %s3187_s3, 256, %s179_s25, [#allocation7], %s2538_s13, %s2538_s13, %s2539_s14  }
  0x48   : > { %p3188_p6 = scmp.ne.s32.totalorder %s3183_s21, 0 }
  0x49   : > { %p3189_p8 = scmp.ne.s32.totalorder (!%p3188_p6), %s3184_s22, 0 }
  0x4a   : > { %213 = sbr.rel (%p3188_p6) target bundleno = 1041 (0x411), region = 36 }
  0x51   : > { %2487 = dma.done.wait (%p3189_p8), [#allocation7], 256  }
  0x52   : > { %2489 = vsyncadd (%p3189_p8), [#allocation7], 4294967040  ;;  %s3170_s10 = sand.u32 1, %s2502_s27   ;;  %s2072_s9 = sshll.u32 %s2514_s29, 1 }
  0x53   : > { %s2071_s25 = sshll.u32 %s3170_s10, 7  ;;  %s2698_s15 = sadd.s32 %s2510_s28, %s2072_s9 }
  0x54   : > { %s2073_s21 = sshll.u32 %s2698_s15, 4  ;;  %p256_p12 = scmp.lt.s32.totalorder %s2510_s28, 0 }
  0x55   : > { %p244_p10 = scmp.lt.s32.totalorder %s2073_s21, 63  ;;  %s257_s20 = ssub.s32 0, %s2510_s28 }
  0x56   : > { %s2076_s22 = smin.u32 %s2510_s28, %s257_s20  ;;  %s3190_s1 = sld [smem:[#allocation35_spill]] }
  0x57   : > { %s3210_s21 = smov (!%p244_p10, %s2073_s21), 63  ;;  %s259_s13 = sand.u32 1, %s2076_s22  }
  0x58   : > { %s2074_s24 = sshll.u32 %s3210_s21, 3  ;;  %s260_s3 = ssub.s32 0, %s259_s13 }
  0x59   : > { %s3212_s3 = smov (!%p256_p12, %s260_s3), %s259_s13  ;;  %s2711_s9 = scalar_lea.vmem [#allocation9], %s2071_s25 }
  0x5a   : > { %p2078_p1 = scmp.lt.s32.totalorder %s3212_s3, 0  ;;  %s266_s29 = sadd.s32 2, %s3212_s3 }
  0x5b   : > { %p2079_p3 = scmp.ne.s32.totalorder %s2510_s28, 0 }
  0x5c   : > { %s2707_s19 = scalar_lea.vmem %s3190_s1, %s2074_s24  ;;  %s3214_s29 = smov (!%p2078_p1, %s266_s29), %s3212_s3 }
  0x5d   : > { %271 = sbr.rel (%p2079_p3) target bundleno = 198 (0xc6), region = 44  ;;  %s2715_s20 = sshll.u32 (!%p2079_p3), %s2698_s15, 7 }
  0x5e   : > { %s2717_s21 = smov (!%p2079_p3), 0  }
  0x64 LB: >> { %s2723_s22 = sshll.u32 %s2530_s21, 3  ;;  %s2530_s21 = sphi %s2717_s21, %s278_s21  }
  0x65   : >> { %s280_s3 = sadd.s32 %s2723_s22, %s2715_s20  ;;  %s2731_s18 = scalar_lea.vmem [#allocation2], %s2723_s22 }
  0x66   : >> { %s281_s25 = sld [smem:[#allocation5 + %s280_s3]] }
  0x6c   : >> { %s282_s14 = scalar_lea.vmem %s3161_s2, %s281_s25 }
  0x6d   : >> { %v301_v0 = vld [vmem:[%s282_s14] sm:$0x1] }
  0x6e   : >> { %302 = vst [vmem:[%s2731_s18] sm:$0x1] %v301_v0 }
  0x6f   : >> { %327 = vsyncadd [#allocation3], 16  ;;  %s328_s10 = sadd.s32 1, %s2723_s22 }
  0x70   : >> { %s329_s1 = sadd.s32 %s2715_s20, %s328_s10 }
  0x71   : >> { %s330_s12 = sld [smem:[#allocation5 + %s329_s1]] }
  0x77   : >> { %s331_s3 = scalar_lea.vmem %s3161_s2, %s330_s12 }
  0x78   : >> { %v350_v1 = vld [vmem:[%s331_s3] sm:$0x1] }
  0x79   : >> { %2084 = vst [vmem:[%s2731_s18 + $0x1] sm:$0x1] %v350_v1 }
  0x7a   : >> { %376 = vsyncadd [#allocation3], 16  ;;  %s377_s25 = sadd.s32 2, %s2723_s22 }
  0x7b   : >> { %s378_s24 = sadd.s32 %s2715_s20, %s377_s25 }
  0x7c   : >> { %s379_s13 = sld [smem:[#allocation5 + %s378_s24]] }
  0x82   : >> { %s380_s23 = scalar_lea.vmem %s3161_s2, %s379_s13 }
  0x83   : >> { %v399_v2 = vld [vmem:[%s380_s23] sm:$0x1] }
  0x84   : >> { %2087 = vst [vmem:[%s2731_s18 + $0x2] sm:$0x1] %v399_v2 }
  0x85   : >> { %425 = vsyncadd [#allocation3], 16  ;;  %s426_s1 = sadd.s32 3, %s2723_s22 }
  0x86   : >> { %s427_s7 = sadd.s32 %s2715_s20, %s426_s1 }
  0x87   : >> { %s428_s11 = sld [smem:[#allocation5 + %s427_s7]] }
  0x8d   : >> { %s429_s3 = scalar_lea.vmem %s3161_s2, %s428_s11 }
  0x8e   : >> { %v448_v3 = vld [vmem:[%s429_s3] sm:$0x1] }
  0x8f   : >> { %2090 = vst [vmem:[%s2731_s18 + $0x3] sm:$0x1] %v448_v3 }
  0x90   : >> { %474 = vsyncadd [#allocation3], 16  ;;  %s475_s30 = sadd.s32 4, %s2723_s22 }
  0x91   : >> { %s476_s23 = sadd.s32 %s2715_s20, %s475_s30 }
  0x92   : >> { %s477_s25 = sld [smem:[#allocation5 + %s476_s23]] }
  0x98   : >> { %s478_s14 = scalar_lea.vmem %s3161_s2, %s477_s25 }
  0x99   : >> { %v497_v4 = vld [vmem:[%s478_s14] sm:$0x1] }
  0x9a   : >> { %2093 = vst [vmem:[%s2731_s18 + $0x4] sm:$0x1] %v497_v4 }
  0x9b   : >> { %523 = vsyncadd [#allocation3], 16  ;;  %s524_s1 = sadd.s32 5, %s2723_s22 }
  0x9c   : >> { %s525_s7 = sadd.s32 %s2715_s20, %s524_s1 }
  0x9d   : >> { %s526_s11 = sld [smem:[#allocation5 + %s525_s7]] }
  0xa3   : >> { %s527_s3 = scalar_lea.vmem %s3161_s2, %s526_s11 }
  0xa4   : >> { %v546_v5 = vld [vmem:[%s527_s3] sm:$0x1] }
  0xa5   : >> { %2096 = vst [vmem:[%s2731_s18 + $0x5] sm:$0x1] %v546_v5 }
  0xa6   : >> { %572 = vsyncadd [#allocation3], 16  ;;  %s573_s30 = sadd.s32 6, %s2723_s22 }
  0xa7   : >> { %s574_s23 = sadd.s32 %s2715_s20, %s573_s30 }
  0xa8   : >> { %s575_s25 = sld [smem:[#allocation5 + %s574_s23]] }
  0xae   : >> { %s576_s14 = scalar_lea.vmem %s3161_s2, %s575_s25 }
  0xaf   : >> { %v595_v6 = vld [vmem:[%s576_s14] sm:$0x1] }
  0xb0   : >> { %2099 = vst [vmem:[%s2731_s18 + $0x6] sm:$0x1] %v595_v6 }
  0xb1   : >> { %621 = vsyncadd [#allocation3], 16  ;;  %s622_s1 = sadd.s32 7, %s2723_s22 }
  0xb2   : >> { %s623_s7 = sadd.s32 %s2715_s20, %s622_s1 }
  0xb3   : >> { %s624_s11 = sld [smem:[#allocation5 + %s623_s7]] }
  0xb9   : >> { %s625_s3 = scalar_lea.vmem %s3161_s2, %s624_s11 }
  0xba   : >> { %v644_v7 = vld [vmem:[%s625_s3] sm:$0x1] }
  0xbb   : >> { %2102 = vst [vmem:[%s2731_s18 + $0x7] sm:$0x1] %v644_v7 }
  0xbc   : >> { %670 = vsyncadd [#allocation3], 16  ;;  %s278_s21 = sadd.s32 1, %s2530_s21  }
  0xbd   : >> { %p275_p5 = scmp.ge.s32.totalorder %s278_s21, 16  }
  0xbf   : > { %277 = sbr.rel (!%p275_p5) target bundleno = 100 (0x64), region = 774 }
  0xc6 PF: > { %s671_s30 = sadd.s32 1, %s2510_s28 }
  0xc7   : > { %p2103_p7 = scmp.ge.s32.totalorder %s671_s30, 2 }
  0xc8   : > { %s2179_s23 = sshll.u32 (!%p2103_p7), %s2698_s15, 7  ;;  %s2784_s24 = smov (!%p2103_p7), 0  }
  0xc9   : > { %675 = sbr.rel (%p2103_p7) target bundleno = 306 (0x132), region = 295  ;;  %s2782_s25 = sadd.s32 (!%p2103_p7), 128, %s2179_s23 }
  0xd0 LB: >> { %s2790_s28 = sshll.u32 %s2534_s24, 3  ;;  %s3191_s22 = ssub.s32 1, %s3214_s29  ;;  %s2534_s24 = sphi %s2784_s24, %s684_s24  }
  0xd1   : >> { %s686_s20 = sadd.s32 %s2782_s25, %s2790_s28  ;;  %s2106_s21 = sshll.u32 %s3191_s22, 7 }
  0xd2   : >> { %s687_s18 = sld [smem:[#allocation5 + %s686_s20]]  ;;  %s690_s13 = sadd.s32 %s2106_s21, %s2790_s28 }
  0xd3   : >> { %s2800_s11 = scalar_lea.vmem [#allocation2], %s690_s13  ;;  %s2805_s12 = scalar_lea.sflag [#allocation3], %s3191_s22 }
  0xd8   : >> { %s688_s7 = scalar_lea.vmem %s3161_s2, %s687_s18 }
  0xd9   : >> { %v710_v8 = vld [vmem:[%s688_s7] sm:$0x1] }
  0xda   : >> { %711 = vst [vmem:[%s2800_s11] sm:$0x1] %v710_v8 }
  0xdb   : >> { %736 = vsyncadd %s2805_s12, 16  ;;  %s737_s10 = sadd.s32 1, %s2790_s28 }
  0xdc   : >> { %s738_s3 = sadd.s32 %s2782_s25, %s737_s10 }
  0xdd   : >> { %s739_s30 = sld [smem:[#allocation5 + %s738_s3]] }
  0xe3   : >> { %s740_s21 = scalar_lea.vmem %s3161_s2, %s739_s30 }
  0xe4   : >> { %v760_v9 = vld [vmem:[%s740_s21] sm:$0x1] }
  0xe5   : >> { %2110 = vst [vmem:[%s2800_s11 + $0x1] sm:$0x1] %v760_v9 }
  0xe6   : >> { %786 = vsyncadd %s2805_s12, 16  ;;  %s787_s18 = sadd.s32 2, %s2790_s28 }
  0xe7   : >> { %s788_s13 = sadd.s32 %s2782_s25, %s787_s18 }
  0xe8   : >> { %s789_s14 = sld [smem:[#allocation5 + %s788_s13]] }
  0xee   : >> { %s790_s22 = scalar_lea.vmem %s3161_s2, %s789_s14 }
  0xef   : >> { %v810_v10 = vld [vmem:[%s790_s22] sm:$0x1] }
  0xf0   : >> { %2114 = vst [vmem:[%s2800_s11 + $0x2] sm:$0x1] %v810_v10 }
  0xf1   : >> { %836 = vsyncadd %s2805_s12, 16  ;;  %s837_s10 = sadd.s32 3, %s2790_s28 }
  0xf2   : >> { %s838_s3 = sadd.s32 %s2782_s25, %s837_s10 }
  0xf3   : >> { %s839_s30 = sld [smem:[#allocation5 + %s838_s3]] }
  0xf9   : >> { %s840_s21 = scalar_lea.vmem %s3161_s2, %s839_s30 }
  0xfa   : >> { %v860_v11 = vld [vmem:[%s840_s21] sm:$0x1] }
  0xfb   : >> { %2118 = vst [vmem:[%s2800_s11 + $0x3] sm:$0x1] %v860_v11 }
  0xfc   : >> { %886 = vsyncadd %s2805_s12, 16  ;;  %s887_s22 = sadd.s32 4, %s2790_s28 }
  0xfd   : >> { %s888_s18 = sadd.s32 %s2782_s25, %s887_s22 }
  0xfe   : >> { %s889_s13 = sld [smem:[#allocation5 + %s888_s18]] }
 0x104   : >> { %s890_s7 = scalar_lea.vmem %s3161_s2, %s889_s13 }
 0x105   : >> { %v910_v12 = vld [vmem:[%s890_s7] sm:$0x1] }
 0x106   : >> { %2122 = vst [vmem:[%s2800_s11 + $0x4] sm:$0x1] %v910_v12 }
 0x107   : >> { %936 = vsyncadd %s2805_s12, 16  ;;  %s937_s10 = sadd.s32 5, %s2790_s28 }
 0x108   : >> { %s938_s3 = sadd.s32 %s2782_s25, %s937_s10 }
 0x109   : >> { %s939_s30 = sld [smem:[#allocation5 + %s938_s3]] }
 0x10f   : >> { %s940_s21 = scalar_lea.vmem %s3161_s2, %s939_s30 }
 0x110   : >> { %v960_v13 = vld [vmem:[%s940_s21] sm:$0x1] }
 0x111   : >> { %2126 = vst [vmem:[%s2800_s11 + $0x5] sm:$0x1] %v960_v13 }
 0x112   : >> { %986 = vsyncadd %s2805_s12, 16  ;;  %s987_s22 = sadd.s32 6, %s2790_s28 }
 0x113   : >> { %s988_s18 = sadd.s32 %s2782_s25, %s987_s22 }
 0x114   : >> { %s989_s13 = sld [smem:[#allocation5 + %s988_s18]] }
 0x11a   : >> { %s990_s7 = scalar_lea.vmem %s3161_s2, %s989_s13 }
 0x11b   : >> { %v1010_v14 = vld [vmem:[%s990_s7] sm:$0x1] }
 0x11c   : >> { %2130 = vst [vmem:[%s2800_s11 + $0x6] sm:$0x1] %v1010_v14 }
 0x11d   : >> { %1036 = vsyncadd %s2805_s12, 16  ;;  %s1037_s10 = sadd.s32 7, %s2790_s28 }
 0x11e   : >> { %s1038_s3 = sadd.s32 %s2782_s25, %s1037_s10 }
 0x11f   : >> { %s1039_s30 = sld [smem:[#allocation5 + %s1038_s3]] }
 0x125   : >> { %s1040_s21 = scalar_lea.vmem %s3161_s2, %s1039_s30 }
 0x126   : >> { %v1060_v15 = vld [vmem:[%s1040_s21] sm:$0x1] }
 0x127   : >> { %2134 = vst [vmem:[%s2800_s11 + $0x7] sm:$0x1] %v1060_v15 }
 0x128   : >> { %1086 = vsyncadd %s2805_s12, 16  ;;  %s684_s24 = sadd.s32 1, %s2534_s24  }
 0x129   : >> { %p681_p9 = scmp.ge.s32.totalorder %s684_s24, 16  }
 0x12b   : > { %683 = sbr.rel (!%p681_p9) target bundleno = 208 (0xd0), region = 785 }
 0x132 PF: > { %v1088_v16 = vld [vmem:[%s2707_s19 + $0x8] sm:$0xff]  ;;  %v1087_v17 = vld [vmem:[%s2707_s19] sm:$0xff]  ;;  %v2540_v18 = vmov 0   ;;  %vm1252_vm0 = vcmask 1041408   ;;  %vm2541_vm1 = vmmov 1   ;;  %v1097_v24 = vld [vmem:[%s2707_s19 + $0x50] sm:$0xff]  ;;  %v1103_v36 = vlaneseq }
 0x133   : > { %2343 = vset.pattern.permute.xlu1 %v2540_v18  ;;  %2342 = vset.pattern.permute.xlu0 %v2540_v18  ;;  %v1096_v19 = vld [vmem:[%s2707_s19 + $0x48] sm:$0xff]  ;;  %v1095_v20 = vld [vmem:[%s2707_s19 + $0x40] sm:$0xff]  ;;  %vm2229_vm2 = vmpackc.low %vm1252_vm0, %vm2541_vm1  ;;  %vm1203_vm3 = vcmask 80896   ;;  %v2542_v40 = vmov 0.0   ;;  %s1403_s24 = scalar_lea.sflag [#allocation3], %s3214_s29 }
 0x134   : > { %1109 = vperm.xlu1 %2343, %v1088_v16   ;;  %1106 = vperm.xlu0 %2342, %v1087_v17   ;;  %v1201_v21 = vld [vmem:[#allocation6] sm:$0xff]  ;;  %v1202_v22 = vld [vmem:[#allocation6 + $0x8] sm:$0x3]  ;;  %v1089_v25 = vld [vmem:[%s2707_s19 + $0x10] sm:$0xff]  ;;  %v2876_v37 = vand.u32 127, %v1103_v36 }
 0x135   : > { %v2228_v23 = vpack.c.bf16 %v1202_v22, %v1201_v21  ;;  %v1098_v26 = vld [vmem:[%s2707_s19 + $0x58] sm:$0xff]  ;;  %v1099_v28 = vld [vmem:[%s2707_s19 + $0x60] sm:$0xff]  ;;  %v1100_v30 = vld [vmem:[%s2707_s19 + $0x68] sm:$0xff] }
 0x136   : > { %v1090_v27 = vld [vmem:[%s2707_s19 + $0x18] sm:$0xff]  ;;  %v1091_v29 = vld [vmem:[%s2707_s19 + $0x20] sm:$0xff]  ;;  %v1092_v31 = vld [vmem:[%s2707_s19 + $0x28] sm:$0xff] }
 0x137   : > { %2230 = vmatprep.subr.msk.bf16.mxu0 %vm2229_vm2, %v2228_v23  ;;  %2234 = vmatprep.subr.msk.bf16.mxu1 %vm2229_vm2, %v2228_v23  ;;  %v1101_v32 = vld [vmem:[%s2707_s19 + $0x70] sm:$0xff]  ;;  %v1102_v34 = vld [vmem:[%s2707_s19 + $0x78] sm:$0xff] }
 0x138   : > { %1133 = vperm.xlu1 %2343, %v1096_v19   ;;  %1130 = vperm.xlu0 %2342, %v1095_v20   ;;  %v1093_v33 = vld [vmem:[%s2707_s19 + $0x30] sm:$0xff]  ;;  %v1094_v35 = vld [vmem:[%s2707_s19 + $0x38] sm:$0xff]  ;;  %s2168_s19 = sshll.u32 %s3214_s29, 7 }
 0x139   : > { %2233 = vmatpush3.bf16.msk.msra.mxu0 %vm2229_vm2, %v2228_v23  ;;  %2235 = vmatpush3.bf16.msk.msra.mxu1 %vm2229_vm2, %v2228_v23  ;;  %s2911_s25 = scalar_lea.vmem [#allocation2], %s2168_s19 }
 0x13c   : > { %1136 = vperm.xlu1 %2343, %v1097_v24   ;;  %1112 = vperm.xlu0 %2342, %v1089_v25  }
 0x140   : > { %1139 = vperm.xlu1 %2343, %v1098_v26   ;;  %1115 = vperm.xlu0 %2342, %v1090_v27  }
 0x144   : > { %1142 = vperm.xlu1 %2343, %v1099_v28   ;;  %1118 = vperm.xlu0 %2342, %v1091_v29  }
 0x148   : > { %1145 = vperm.xlu1 %2343, %v1100_v30   ;;  %1121 = vperm.xlu0 %2342, %v1092_v31  }
 0x14c   : > { %1148 = vperm.xlu1 %2343, %v1101_v32   ;;  %1124 = vperm.xlu0 %2342, %v1093_v33  }
 0x150   : > { %1151 = vperm.xlu1 %2343, %v1102_v34   ;;  %1127 = vperm.xlu0 %2342, %v1094_v35  }
 0x1b3   : > { %v1110_v38 = vpop.permute.xlu1 %1109  ;;  %v1107_v39 = vpop.permute.xlu0 %1106 }
 0x1b4   : > { %vm1154_vm4 = vcmp.eq.s32.totalorder %v1110_v38, %v2876_v37  ;;  %vm1153_vm5 = vcmp.eq.s32.totalorder %v1107_v39, %v2876_v37 }
 0x1b5   : > { %v2136_v41 = vsel %vm1154_vm4, 1.0, %v2542_v40  ;;  %v2135_v42 = vsel %vm1153_vm5, 1.0, %v2542_v40 }
 0x1b6   : > { %2204 = vmatprep.mubr.msk.f32.mxu0 %vm1203_vm3, %v2135_v42 }
 0x1b7   : > { %v1134_v43 = vpop.permute.xlu1 %1133  ;;  %2205 = vmatmul.mubr.msk.f32.vlgmr.msra.gmra.mrb[0].mxu0 %vm1203_vm3, %v2136_v41  ;;  %v1131_v44 = vpop.permute.xlu0 %1130 }
 0x1b8   : > { %vm1162_vm6 = vcmp.eq.s32.totalorder %v1134_v43, %v2876_v37  ;;  %vm1161_vm7 = vcmp.eq.s32.totalorder %v1131_v44, %v2876_v37 }
 0x1b9   : > { %v2144_v45 = vsel %vm1162_vm6, 1.0, %v2542_v40  ;;  %v2143_v46 = vsel %vm1161_vm7, 1.0, %v2542_v40 }
 0x1ba   : > { %2216 = vmatprep.mubr.msk.f32.mxu1 %vm1203_vm3, %v2143_v46 }
 0x1bb   : > { %v1137_v47 = vpop.permute.xlu1 %1136  ;;  %2217 = vmatmul.mubr.msk.f32.vlgmr.msra.gmra.mrb[0].mxu1 %vm1203_vm3, %v2144_v45  ;;  %v1113_v48 = vpop.permute.xlu0 %1112 }
 0x1bc   : > { %vm1163_vm8 = vcmp.eq.s32.totalorder %v1137_v47, %v2876_v37  ;;  %vm1155_vm9 = vcmp.eq.s32.totalorder %v1113_v48, %v2876_v37 }
 0x1bd   : > { %v2145_v49 = vsel %vm1163_vm8, 1.0, %v2542_v40  ;;  %v2137_v50 = vsel %vm1155_vm9, 1.0, %v2542_v40 }
 0x1be   : > { %2207 = vmatprep.mubr.msk.f32.mxu0 %vm1203_vm3, %v2137_v50  ;;  %2219 = vmatprep.mubr.msk.f32.mxu1 %vm1203_vm3, %v2145_v49 }
 0x1bf   : > { %v1140_v51 = vpop.permute.xlu1 %1139  ;;  %v1116_v52 = vpop.permute.xlu0 %1115 }
 0x1c0   : > { %vm1164_vm10 = vcmp.eq.s32.totalorder %v1140_v51, %v2876_v37  ;;  %vm1156_vm11 = vcmp.eq.s32.totalorder %v1116_v52, %v2876_v37 }
 0x1c1   : > { %v2146_v53 = vsel %vm1164_vm10, 1.0, %v2542_v40  ;;  %v2138_v54 = vsel %vm1156_vm11, 1.0, %v2542_v40 }
 0x1c2   : > { %2208 = vmatmul.mubr.msk.f32.gmra.mrb[2].mxu0 %vm1203_vm3, %v2138_v54  ;;  %2220 = vmatmul.mubr.msk.f32.gmra.mrb[2].mxu1 %vm1203_vm3, %v2146_v53 }
 0x1c3   : > { %v1143_v55 = vpop.permute.xlu1 %1142  ;;  %v1119_v56 = vpop.permute.xlu0 %1118 }
 0x1c4   : > { %vm1165_vm12 = vcmp.eq.s32.totalorder %v1143_v55, %v2876_v37  ;;  %vm1157_vm13 = vcmp.eq.s32.totalorder %v1119_v56, %v2876_v37 }
 0x1c5   : > { %v2147_v57 = vsel %vm1165_vm12, 1.0, %v2542_v40  ;;  %v2139_v58 = vsel %vm1157_vm13, 1.0, %v2542_v40 }
 0x1c6   : > { %2210 = vmatprep.mubr.msk.f32.mxu0 %vm1203_vm3, %v2139_v58  ;;  %2222 = vmatprep.mubr.msk.f32.mxu1 %vm1203_vm3, %v2147_v57 }
 0x1c7   : > { %v1146_v59 = vpop.permute.xlu1 %1145  ;;  %v1122_v60 = vpop.permute.xlu0 %1121 }
 0x1c8   : > { %vm1166_vm14 = vcmp.eq.s32.totalorder %v1146_v59, %v2876_v37  ;;  %vm1158_vm15 = vcmp.eq.s32.totalorder %v1122_v60, %v2876_v37 }
 0x1c9   : > { %v2148_v61 = vsel %vm1166_vm14, 1.0, %v2542_v40  ;;  %v2140_v62 = vsel %vm1158_vm15, 1.0, %v2542_v40 }
 0x1ca   : > { %2211 = vmatmul.mubr.msk.f32.gmra.mrb[4].mxu0 %vm1203_vm3, %v2140_v62  ;;  %2223 = vmatmul.mubr.msk.f32.gmra.mrb[4].mxu1 %vm1203_vm3, %v2148_v61 }
 0x1cb   : > { %v1149_v63 = vpop.permute.xlu1 %1148  ;;  %v1125_v0 = vpop.permute.xlu0 %1124 }
 0x1cc   : > { %vm1167_vm0 = vcmp.eq.s32.totalorder %v1149_v63, %v2876_v37  ;;  %vm1159_vm1 = vcmp.eq.s32.totalorder %v1125_v0, %v2876_v37 }
 0x1cd   : > { %v2149_v1 = vsel %vm1167_vm0, 1.0, %v2542_v40  ;;  %v2141_v2 = vsel %vm1159_vm1, 1.0, %v2542_v40 }
 0x1ce   : > { %2213 = vmatprep.mubr.msk.f32.mxu0 %vm1203_vm3, %v2141_v2  ;;  %2225 = vmatprep.mubr.msk.f32.mxu1 %vm1203_vm3, %v2149_v1 }
 0x1cf   : > { %v1152_v3 = vpop.permute.xlu1 %1151  ;;  %v1128_v4 = vpop.permute.xlu0 %1127 }
 0x1d0   : > { %vm1168_vm2 = vcmp.eq.s32.totalorder %v1152_v3, %v2876_v37  ;;  %vm1160_vm4 = vcmp.eq.s32.totalorder %v1128_v4, %v2876_v37 }
 0x1d1   : > { %v2150_v5 = vsel %vm1168_vm2, 1.0, %v2542_v40  ;;  %v2142_v6 = vsel %vm1160_vm4, 1.0, %v2542_v40 }
 0x1d2   : > { %2214 = vmatmul.mubr.msk.f32.gmra.mrb[6].mxu0 %vm1203_vm3, %v2142_v6  ;;  %2226 = vmatmul.mubr.msk.f32.gmra.mrb[6].mxu1 %vm1203_vm3, %v2150_v5 }
 0x28a   : > { %v2206_v7 = vpop.f32.mrb[0].mxu0 }
 0x28b   : > { %v1322_v8 = vpop.f32.mrb[1].mxu0 }
 0x28e   : > { %v2218_v9 = vpop.f32.mrb[0].mxu1 }
 0x28f   : > { %v1362_v10 = vpop.f32.mrb[1].mxu1 }
 0x295   : > { %v2209_v11 = vpop.f32.mrb[2].mxu0  ;;  %v2221_v12 = vpop.f32.mrb[2].mxu1 }
 0x296   : > { %v1332_v13 = vpop.f32.mrb[3].mxu0  ;;  %v1372_v14 = vpop.f32.mrb[3].mxu1 }
 0x29d   : > { %v2212_v15 = vpop.f32.mrb[4].mxu0  ;;  %v2224_v16 = vpop.f32.mrb[4].mxu1 }
 0x29e   : > { %v1342_v17 = vpop.f32.mrb[5].mxu0  ;;  %v1382_v18 = vpop.f32.mrb[5].mxu1 }
 0x2a5   : > { %v2215_v19 = vpop.f32.mrb[6].mxu0  ;;  %v2227_v20 = vpop.f32.mrb[6].mxu1 }
 0x2a6   : > { %v1352_v21 = vpop.f32.mrb[7].mxu0  ;;  %v1392_v22 = vpop.f32.mrb[7].mxu1 }
 0x2a7   : > { %2490 = dma.done.wait %s1403_s24, 2048 }
 0x2a8   : > { %2491 = vsyncadd %s1403_s24, 4294965248  ;;  %v1407_v23 = vld [vmem:[%s2911_s25] sm:$0xff]  ;;  %v1409_v24 = vld [vmem:[%s2911_s25 + $0x10] sm:$0xff]  ;;  %s2181_s22 = sshll.u32 %s2698_s15, 11  ;;  %s1694_s18 = sshll.u32 %s2711_s9, 4  ;;  %s3101_s18 = int_to_ptr.vmem [resolvable:$true] %s1694_s18 }
 0x2a9   : > { %v1408_v25 = vld [vmem:[%s2911_s25 + $0x8] sm:$0xff]  ;;  %v1423_v26 = vadd.f32 %v1407_v23, %v1322_v8  ;;  %v1425_v27 = vadd.f32 %v1409_v24, %v1332_v13  ;;  %v1410_v28 = vld [vmem:[%s2911_s25 + $0x18] sm:$0xff]  ;;  %v1411_v31 = vld [vmem:[%s2911_s25 + $0x20] sm:$0xff]  ;;  %s3099_s1 = scalar_lea.hbm %s3165_s6, %s2181_s22  ;;  %s3192_s15 = sand.u32 1, %s2502_s27  }
 0x2aa   : > { %v1424_v29 = vadd.f32 %v2206_v7, %v1408_v25  ;;  %v1426_v30 = vadd.f32 %v2209_v11, %v1410_v28  ;;  %v1412_v32 = vld [vmem:[%s2911_s25 + $0x28] sm:$0xff]  ;;  %v1427_v33 = vadd.f32 %v1411_v31, %v1342_v17  ;;  %v1413_v35 = vld [vmem:[%s2911_s25 + $0x30] sm:$0xff]  ;;  %v1414_v36 = vld [vmem:[%s2911_s25 + $0x38] sm:$0xff]  ;;  %s3107_s7 = scalar_lea.sflag [#allocation8], %s3192_s15  ;;  %s2416_s10 = scalar_lea.vmem %s3101_s18, 2048 }
 0x2ab   : > { %1439 = vadd.xlane.f32.xlu0 %v1423_v26  ;;  %1443 = vadd.xlane.f32.xlu1 %v1425_v27  ;;  %v1428_v34 = vadd.f32 %v2212_v15, %v1412_v32  ;;  %v1429_v37 = vadd.f32 %v1413_v35, %v1352_v21  ;;  %v1430_v38 = vadd.f32 %v2215_v19, %v1414_v36  ;;  %v1415_v39 = vld [vmem:[%s2911_s25 + $0x40] sm:$0xff]  ;;  %v1416_v40 = vld [vmem:[%s2911_s25 + $0x48] sm:$0xff]  ;;  %v1417_v43 = vld [vmem:[%s2911_s25 + $0x50] sm:$0xff]  ;;  %p2417_p11 = scmp.ne.s32.totalorder %s3101_s18, %s2416_s10  ;;  %p3193_p13 = scmp.ne.s32.totalorder %s3180_s16, 0 }
 0x2ac   : > { %v1431_v41 = vadd.f32 %v1415_v39, %v1362_v10  ;;  %v2924_v42 = vadd.f32 %v2218_v9, %v1416_v40  ;;  %v1418_v44 = vld [vmem:[%s2911_s25 + $0x58] sm:$0xff]  ;;  %v2929_v45 = vadd.f32 %v1417_v43, %v1372_v14  ;;  %v1419_v47 = vld [vmem:[%s2911_s25 + $0x60] sm:$0xff]  ;;  %v1420_v48 = vld [vmem:[%s2911_s25 + $0x68] sm:$0xff]  ;;  %s2543_s3 = smov [#allocation9]  }
 0x2ad   : > { %v2931_v46 = vadd.f32 %v2221_v12, %v1418_v44  ;;  %v2937_v49 = vadd.f32 %v1419_v47, %v1382_v18  ;;  %v2939_v50 = vadd.f32 %v2224_v16, %v1420_v48  ;;  %v1421_v51 = vld [vmem:[%s2911_s25 + $0x70] sm:$0xff]  ;;  %v1422_v52 = vld [vmem:[%s2911_s25 + $0x78] sm:$0xff]  ;;  %p2418_p0 = pnand %p2417_p11, %p3193_p13  ;;  %s2420_s30 = sshll.u32 %s2543_s3, 4  ;;  %s2421_s30 = int_to_ptr.vmem [resolvable:$false] %s2420_s30 }
 0x2ae   : > { %v2945_v53 = vadd.f32 %v1421_v51, %v1392_v22  ;;  %v2947_v54 = vadd.f32 %v2227_v20, %v1422_v52  ;;  %s2422_s23 = scalar_lea.vmem %s2421_s30, 4096  ;;  %p2423_p4 = scmp.lt.s32.totalorder %s3101_s18, %s2421_s30 }
 0x2af   : > { %1441 = vadd.xlane.f32.xlu0 %v1424_v29  ;;  %1445 = vadd.xlane.f32.xlu1 %v1426_v30  ;;  %p2419_p2 = pneg %p2418_p0  ;;  %p2424_p6 = scmp.lt.s32.totalorder %s2422_s23, %s2416_s10 }
 0x2b1   : > { %p2425_p8 = por %p2424_p6, %p2423_p4 }
 0x2b3   : > { %1447 = vadd.xlane.f32.xlu0 %v1427_v33  ;;  %1449 = vadd.xlane.f32.xlu1 %v1428_v34  ;;  %p2426_p10 = pnand %p2425_p8, %p2419_p2 }
 0x2b7   : > { %1451 = vadd.xlane.f32.xlu0 %v1429_v37  ;;  %1453 = vadd.xlane.f32.xlu1 %v1430_v38 }
 0x2bb   : > { %1455 = vadd.xlane.f32.xlu0 %v1431_v41  ;;  %1457 = vadd.xlane.f32.xlu1 %v2924_v42 }
 0x2bf   : > { %1459 = vadd.xlane.f32.xlu0 %v2929_v45  ;;  %1461 = vadd.xlane.f32.xlu1 %v2931_v46 }
 0x2c3   : > { %1463 = vadd.xlane.f32.xlu0 %v2937_v49  ;;  %1465 = vadd.xlane.f32.xlu1 %v2939_v50 }
 0x2c7   : > { %1467 = vadd.xlane.f32.xlu0 %v2945_v53  ;;  %1469 = vadd.xlane.f32.xlu1 %v2947_v54 }
 0x338   : > { %v1440_v55 = vpop.xlane.xlu0 %1439  ;;  %v1444_v56 = vpop.xlane.xlu1 %1443 }
 0x339   : > { %v1472_v57 = vmul.f32 0.0078125, %v1440_v55  ;;  %v1474_v58 = vmul.f32 0.0078125, %v1444_v56 }
 0x33b   : > { %v2951_v59 = vsub.f32 %v1423_v26, %v1472_v57  ;;  %v2953_v60 = vsub.f32 %v1425_v27, %v1474_v58 }
 0x33c   : > { %v1442_v61 = vpop.xlane.xlu0 %1441  ;;  %v1446_v62 = vpop.xlane.xlu1 %1445 }
 0x33d   : > { %v1473_v63 = vmul.f32 0.0078125, %v1442_v61  ;;  %v1504_v0 = vmul.f32 %v2951_v59, %v2951_v59  ;;  %v1475_v1 = vmul.f32 0.0078125, %v1446_v62  ;;  %v1506_v4 = vmul.f32 %v2953_v60, %v2953_v60 }
 0x33f   : > { %v2957_v2 = vsub.f32 %v1424_v29, %v1473_v63  ;;  %1520 = vadd.xlane.f32.xlu0 %v1504_v0  ;;  %v2959_v3 = vsub.f32 %v1426_v30, %v1475_v1 }
 0x340   : > { %v1448_v5 = vpop.xlane.xlu0 %1447  ;;  %v1450_v6 = vpop.xlane.xlu1 %1449 }
 0x341   : > { %v1476_v7 = vmul.f32 0.0078125, %v1448_v5  ;;  %v1505_v8 = vmul.f32 %v2957_v2, %v2957_v2  ;;  %v1477_v9 = vmul.f32 0.0078125, %v1450_v6  ;;  %v1507_v12 = vmul.f32 %v2959_v3, %v2959_v3 }
 0x343   : > { %v2965_v10 = vsub.f32 %v1427_v33, %v1476_v7  ;;  %1524 = vadd.xlane.f32.xlu0 %v1506_v4  ;;  %1522 = vadd.xlane.f32.xlu1 %v1505_v8  ;;  %v2967_v11 = vsub.f32 %v1428_v34, %v1477_v9 }
 0x344   : > { %v1452_v13 = vpop.xlane.xlu0 %1451  ;;  %v1454_v14 = vpop.xlane.xlu1 %1453 }
 0x345   : > { %v1478_v15 = vmul.f32 0.0078125, %v1452_v13  ;;  %v1508_v16 = vmul.f32 %v2965_v10, %v2965_v10  ;;  %v1479_v17 = vmul.f32 0.0078125, %v1454_v14  ;;  %v1509_v20 = vmul.f32 %v2967_v11, %v2967_v11 }
 0x347   : > { %v2973_v18 = vsub.f32 %v1429_v37, %v1478_v15  ;;  %1526 = vadd.xlane.f32.xlu1 %v1507_v12  ;;  %1528 = vadd.xlane.f32.xlu0 %v1508_v16  ;;  %v2975_v19 = vsub.f32 %v1430_v38, %v1479_v17  ;;  %v3025_v17 = vld [vmem:[%s3163_s4] ss:$0 sm:$0xff] }
 0x348   : > { %v1456_v21 = vpop.xlane.xlu0 %1455  ;;  %v1458_v22 = vpop.xlane.xlu1 %1457 }
 0x349   : > { %v1480_v23 = vmul.f32 0.0078125, %v1456_v21  ;;  %v1510_v24 = vmul.f32 %v2973_v18, %v2973_v18  ;;  %v1481_v25 = vmul.f32 0.0078125, %v1458_v22  ;;  %v1511_v28 = vmul.f32 %v2975_v19, %v2975_v19 }
 0x34b   : > { %v2981_v26 = vsub.f32 %v1431_v41, %v1480_v23  ;;  %1530 = vadd.xlane.f32.xlu1 %v1509_v20  ;;  %1532 = vadd.xlane.f32.xlu0 %v1510_v24  ;;  %v2984_v27 = vsub.f32 %v2924_v42, %v1481_v25  ;;  %v3031_v25 = vld [vmem:[%s3164_s5] ss:$0 sm:$0xff] }
 0x34c   : > { %v1460_v29 = vpop.xlane.xlu0 %1459  ;;  %v1462_v30 = vpop.xlane.xlu1 %1461 }
 0x34d   : > { %v1482_v31 = vmul.f32 0.0078125, %v1460_v29  ;;  %v1512_v32 = vmul.f32 %v2981_v26, %v2981_v26  ;;  %v1483_v33 = vmul.f32 0.0078125, %v1462_v30  ;;  %v1513_v36 = vmul.f32 %v2984_v27, %v2984_v27 }
 0x34f   : > { %v2991_v34 = vsub.f32 %v2929_v45, %v1482_v31  ;;  %1534 = vadd.xlane.f32.xlu1 %v1511_v28  ;;  %1536 = vadd.xlane.f32.xlu0 %v1512_v32  ;;  %v2994_v35 = vsub.f32 %v2931_v46, %v1483_v33 }
 0x350   : > { %v1464_v37 = vpop.xlane.xlu0 %1463  ;;  %v1466_v38 = vpop.xlane.xlu1 %1465 }
 0x351   : > { %v1484_v39 = vmul.f32 0.0078125, %v1464_v37  ;;  %v1514_v40 = vmul.f32 %v2991_v34, %v2991_v34  ;;  %v1485_v41 = vmul.f32 0.0078125, %v1466_v38  ;;  %v1515_v44 = vmul.f32 %v2994_v35, %v2994_v35 }
 0x353   : > { %v3001_v42 = vsub.f32 %v2937_v49, %v1484_v39  ;;  %1538 = vadd.xlane.f32.xlu1 %v1513_v36  ;;  %1540 = vadd.xlane.f32.xlu0 %v1514_v40  ;;  %v3004_v43 = vsub.f32 %v2939_v50, %v1485_v41 }
 0x354   : > { %v1468_v45 = vpop.xlane.xlu0 %1467  ;;  %v1470_v46 = vpop.xlane.xlu1 %1469 }
 0x355   : > { %v1486_v47 = vmul.f32 0.0078125, %v1468_v45  ;;  %v1516_v48 = vmul.f32 %v3001_v42, %v3001_v42  ;;  %v1487_v51 = vmul.f32 0.0078125, %v1470_v46  ;;  %v1517_v50 = vmul.f32 %v3004_v43, %v3004_v43 }
 0x357   : > { %v3011_v52 = vsub.f32 %v2945_v53, %v1486_v47  ;;  %1542 = vadd.xlane.f32.xlu1 %v1515_v44  ;;  %1544 = vadd.xlane.f32.xlu0 %v1516_v48  ;;  %v3014_v49 = vsub.f32 %v2947_v54, %v1487_v51 }
 0x359   : > { %v1518_v55 = vmul.f32 %v3011_v52, %v3011_v52  ;;  %v1519_v56 = vmul.f32 %v3014_v49, %v3014_v49 }
 0x35b   : > { %1546 = vadd.xlane.f32.xlu1 %v1517_v50  ;;  %1548 = vadd.xlane.f32.xlu0 %v1518_v55 }
 0x35f   : > { %1550 = vadd.xlane.f32.xlu1 %v1519_v56 }
 0x3cc   : > { %v1521_v57 = vpop.xlane.xlu0 %1520 }
 0x3cd   : > { %v1552_v53 = vmul.f32 0.0078125, %v1521_v57 }
 0x3cf   : > { %v1568_v58 = vadd.f32 1e-12, %v1552_v53 }
 0x3d0   : > { %v1523_v61 = vpop.xlane.xlu1 %1522  ;;  %v1525_v62 = vpop.xlane.xlu0 %1524 }
 0x3d1   : > { %2344 = vrsqrt.f32 %v1568_v58  ;;  %v1553_v54 = vmul.f32 0.0078125, %v1523_v61  ;;  %v1554_v63 = vmul.f32 0.0078125, %v1525_v62 }
 0x3d3   : > { %v1569_v0 = vadd.f32 1e-12, %v1553_v54  ;;  %v1570_v1 = vadd.f32 1e-12, %v1554_v63 }
 0x3d4   : > { %v1527_v4 = vpop.xlane.xlu1 %1526  ;;  %v1529_v5 = vpop.xlane.xlu0 %1528 }
 0x3d5   : > { %2346 = vrsqrt.f32 %v1569_v0  ;;  %v1555_v6 = vmul.f32 0.0078125, %v1527_v4  ;;  %v1556_v7 = vmul.f32 0.0078125, %v1529_v5 }
 0x3d6   : > { %2348 = vrsqrt.f32 %v1570_v1 }
 0x3d7   : > { %v1571_v8 = vadd.f32 1e-12, %v1555_v6  ;;  %v1572_v9 = vadd.f32 1e-12, %v1556_v7 }
 0x3d8   : > { %v1531_v12 = vpop.xlane.xlu1 %1530  ;;  %v1533_v13 = vpop.xlane.xlu0 %1532 }
 0x3d9   : > { %2350 = vrsqrt.f32 %v1571_v8  ;;  %v1557_v14 = vmul.f32 0.0078125, %v1531_v12  ;;  %v1558_v15 = vmul.f32 0.0078125, %v1533_v13 }
 0x3da   : > { %2352 = vrsqrt.f32 %v1572_v9 }
 0x3db   : > { %v2345_v16 = vpop.eup %2344  ;;  %v1573_v20 = vadd.f32 1e-12, %v1557_v14  ;;  %v1574_v21 = vadd.f32 1e-12, %v1558_v15 }
 0x3dc   : > { %v1600_v22 = vmul.f32 %v2345_v16, %v2951_v59  ;;  %v1535_v23 = vpop.xlane.xlu1 %1534  ;;  %v1537_v24 = vpop.xlane.xlu0 %1536 }
 0x3dd   : > { %2354 = vrsqrt.f32 %v1573_v20  ;;  %v1559_v28 = vmul.f32 0.0078125, %v1535_v23  ;;  %v1560_v29 = vmul.f32 0.0078125, %v1537_v24 }
 0x3de   : > { %v1623_v30 = vmul.f32 %v3025_v17, %v1600_v22  ;;  %2356 = vrsqrt.f32 %v1574_v21 }
 0x3df   : > { %v2347_v31 = vpop.eup %2346  ;;  %v1575_v32 = vadd.f32 1e-12, %v1559_v28  ;;  %v1576_v33 = vadd.f32 1e-12, %v1560_v29 }
 0x3e0   : > { %v2349_v36 = vpop.eup %2348  ;;  %v1646_v59 = vadd.f32 %v3031_v25, %v1623_v30  ;;  %v1601_v37 = vmul.f32 %v2347_v31, %v2957_v2  ;;  %v1539_v38 = vpop.xlane.xlu1 %1538 }
 0x3e1   : > { %v1541_v39 = vpop.xlane.xlu0 %1540  ;;  %v1602_v40 = vmul.f32 %v2349_v36, %v2953_v60  ;;  %2358 = vrsqrt.f32 %v1575_v32  ;;  %v1561_v41 = vmul.f32 0.0078125, %v1539_v38 }
 0x3e2   : > { %v1562_v44 = vmul.f32 0.0078125, %v1541_v39  ;;  %1662 = vst [vmem:[%s2711_s9] sm:$0xff] %v1646_v59  ;;  %v1624_v45 = vmul.f32 %v3025_v17, %v1601_v37  ;;  %2360 = vrsqrt.f32 %v1576_v33 }
 0x3e3   : > { %v2351_v46 = vpop.eup %2350  ;;  %v1625_v47 = vmul.f32 %v3025_v17, %v1602_v40  ;;  %v1577_v48 = vadd.f32 1e-12, %v1561_v41 }
 0x3e4   : > { %v1578_v51 = vadd.f32 1e-12, %v1562_v44  ;;  %v2353_v50 = vpop.eup %2352  ;;  %v1647_v2 = vadd.f32 %v3031_v25, %v1624_v45  ;;  %v1603_v55 = vmul.f32 %v2351_v46, %v2959_v3  ;;  %v1543_v60 = vpop.xlane.xlu1 %1542 }
 0x3e5   : > { %v1545_v56 = vpop.xlane.xlu0 %1544  ;;  %v1648_v57 = vadd.f32 %v3031_v25, %v1625_v47  ;;  %v1604_v53 = vmul.f32 %v2353_v50, %v2965_v10  ;;  %2362 = vrsqrt.f32 %v1577_v48  ;;  %v1563_v58 = vmul.f32 0.0078125, %v1543_v60 }
 0x3e6   : > { %1663 = vst [vmem:[%s2711_s9 + $0x8] sm:$0xff] %v1647_v2  ;;  %v1626_v61 = vmul.f32 %v3025_v17, %v1603_v55  ;;  %2364 = vrsqrt.f32 %v1578_v51  ;;  %v1564_v62 = vmul.f32 0.0078125, %v1545_v56 }
 0x3e7   : > { %v2355_v54 = vpop.eup %2354  ;;  %1664 = vst [vmem:[%s2711_s9 + $0x10] sm:$0xff] %v1648_v57  ;;  %v1627_v63 = vmul.f32 %v3025_v17, %v1604_v53  ;;  %v1579_v0 = vadd.f32 1e-12, %v1563_v58 }
 0x3e8   : > { %v2357_v3 = vpop.eup %2356  ;;  %v1649_v1 = vadd.f32 %v3031_v25, %v1626_v61  ;;  %v1605_v4 = vmul.f32 %v2355_v54, %v2967_v11  ;;  %v1580_v10 = vadd.f32 1e-12, %v1564_v62  ;;  %v1547_v5 = vpop.xlane.xlu1 %1546 }
 0x3e9   : > { %v1549_v6 = vpop.xlane.xlu0 %1548  ;;  %v1650_v7 = vadd.f32 %v3031_v25, %v1627_v63  ;;  %v1606_v8 = vmul.f32 %v2357_v3, %v2973_v18  ;;  %2366 = vrsqrt.f32 %v1579_v0  ;;  %v1565_v9 = vmul.f32 0.0078125, %v1547_v5 }
 0x3ea   : > { %1665 = vst [vmem:[%s2711_s9 + $0x18] sm:$0xff] %v1649_v1  ;;  %v1628_v12 = vmul.f32 %v3025_v17, %v1605_v4  ;;  %2368 = vrsqrt.f32 %v1580_v10  ;;  %v1566_v13 = vmul.f32 0.0078125, %v1549_v6 }
 0x3eb   : > { %v2359_v14 = vpop.eup %2358  ;;  %1666 = vst [vmem:[%s2711_s9 + $0x20] sm:$0xff] %v1650_v7  ;;  %v1629_v11 = vmul.f32 %v3025_v17, %v1606_v8  ;;  %v1581_v15 = vadd.f32 1e-12, %v1565_v9 }
 0x3ec   : > { %v2361_v16 = vpop.eup %2360  ;;  %v1651_v20 = vadd.f32 %v3031_v25, %v1628_v12  ;;  %v1607_v21 = vmul.f32 %v2359_v14, %v2975_v19  ;;  %v1582_v18 = vadd.f32 1e-12, %v1566_v13  ;;  %v1551_v22 = vpop.xlane.xlu1 %1550 }
 0x3ed   : > { %v1652_v23 = vadd.f32 %v3031_v25, %v1629_v11  ;;  %v1608_v24 = vmul.f32 %v2361_v16, %v2981_v26  ;;  %2370 = vrsqrt.f32 %v1581_v15  ;;  %v1567_v28 = vmul.f32 0.0078125, %v1551_v22 }
 0x3ee   : > { %1667 = vst [vmem:[%s2711_s9 + $0x28] sm:$0xff] %v1651_v20  ;;  %v1630_v29 = vmul.f32 %v3025_v17, %v1607_v21  ;;  %2372 = vrsqrt.f32 %v1582_v18 }
 0x3ef   : > { %v2363_v30 = vpop.eup %2362  ;;  %1668 = vst [vmem:[%s2711_s9 + $0x30] sm:$0xff] %v1652_v23  ;;  %v1631_v31 = vmul.f32 %v3025_v17, %v1608_v24  ;;  %v1583_v32 = vadd.f32 1e-12, %v1567_v28 }
 0x3f0   : > { %v2365_v19 = vpop.eup %2364  ;;  %v1653_v33 = vadd.f32 %v3031_v25, %v1630_v29  ;;  %v1609_v36 = vmul.f32 %v2363_v30, %v2984_v27 }
 0x3f1   : > { %v1654_v26 = vadd.f32 %v3031_v25, %v1631_v31  ;;  %v1610_v59 = vmul.f32 %v2365_v19, %v2991_v34  ;;  %2374 = vrsqrt.f32 %v1583_v32 }
 0x3f2   : > { %1669 = vst [vmem:[%s2711_s9 + $0x38] sm:$0xff] %v1653_v33  ;;  %v1632_v37 = vmul.f32 %v3025_v17, %v1609_v36 }
 0x3f3   : > { %v2367_v38 = vpop.eup %2366  ;;  %1670 = vst [vmem:[%s2711_s9 + $0x40] sm:$0xff] %v1654_v26  ;;  %v1633_v39 = vmul.f32 %v3025_v17, %v1610_v59 }
 0x3f4   : > { %v2369_v40 = vpop.eup %2368  ;;  %v1655_v41 = vadd.f32 %v3031_v25, %v1632_v37  ;;  %v1611_v44 = vmul.f32 %v2367_v38, %v2994_v35 }
 0x3f5   : > { %v1656_v27 = vadd.f32 %v3031_v25, %v1633_v39  ;;  %v1612_v45 = vmul.f32 %v2369_v40, %v3001_v42 }
 0x3f6   : > { %1671 = vst [vmem:[%s2711_s9 + $0x48] sm:$0xff] %v1655_v41  ;;  %v1634_v34 = vmul.f32 %v3025_v17, %v1611_v44 }
 0x3f7   : > { %v2371_v46 = vpop.eup %2370  ;;  %1672 = vst [vmem:[%s2711_s9 + $0x50] sm:$0xff] %v1656_v27  ;;  %v1635_v47 = vmul.f32 %v3025_v17, %v1612_v45 }
 0x3f8   : > { %v2373_v48 = vpop.eup %2372  ;;  %v1657_v51 = vadd.f32 %v3031_v25, %v1634_v34  ;;  %v1613_v35 = vmul.f32 %v2371_v46, %v3004_v43 }
 0x3f9   : > { %v1658_v50 = vadd.f32 %v3031_v25, %v1635_v47  ;;  %v1614_v42 = vmul.f32 %v2373_v48, %v3011_v52 }
 0x3fa   : > { %1673 = vst [vmem:[%s2711_s9 + $0x58] sm:$0xff] %v1657_v51  ;;  %v1636_v2 = vmul.f32 %v3025_v17, %v1613_v35 }
 0x3fb   : > { %v2375_v55 = vpop.eup %2374  ;;  %1674 = vst [vmem:[%s2711_s9 + $0x60] sm:$0xff] %v1658_v50  ;;  %v1637_v60 = vmul.f32 %v3025_v17, %v1614_v42 }
 0x3fc   : > { %v1659_v56 = vadd.f32 %v3031_v25, %v1636_v2  ;;  %v1615_v57 = vmul.f32 %v2375_v55, %v3014_v49 }
 0x3fd   : > { %v1660_v43 = vadd.f32 %v3031_v25, %v1637_v60 }
 0x3fe   : > { %1675 = vst [vmem:[%s2711_s9 + $0x68] sm:$0xff] %v1659_v56  ;;  %v1638_v52 = vmul.f32 %v3025_v17, %v1615_v57 }
 0x3ff   : > { %1676 = vst [vmem:[%s2711_s9 + $0x70] sm:$0xff] %v1660_v43 }
 0x400   : > { %v1661_v49 = vadd.f32 %v3031_v25, %v1638_v52 }
 0x402   : > { %1677 = vst [vmem:[%s2711_s9 + $0x78] sm:$0xff] %v1661_v49 }
 0x403   : > { %2429 = shalt.err (!%p2426_p10)
}
 0x404   : > { %s2430_s9 = scalar_lea.hbm %s3099_s1, 2048  ;;  %s2434_s19 = scalar_lea.hbm %s3165_s6, 8192 }
 0x405   : > { %p2431_p12 = scmp.ne.s32.totalorder %s3099_s1, %s2430_s9  ;;  %p2435_p5 = scmp.lt.u32.totalorder %s3099_s1, %s3165_s6 }
 0x406   : > { %p2436_p7 = scmp.lt.u32.totalorder %s2434_s19, %s2430_s9  ;;  %p2438_p11 = scmp.lt.u32.totalorder %s2430_s9, %s3099_s1 }
 0x407   : > { %p2432_p1 = pnand %p2431_p12, %p3193_p13 }
 0x408   : > { %p2437_p9 = por %p2436_p7, %p2435_p5 }
 0x409   : > { %p2433_p3 = pneg %p2432_p1 }
 0x40a   : > { %p2439_p0 = por %p2438_p11, %p2437_p9 }
 0x40c   : > { %p2440_p2 = pnand %p2439_p0, %p2433_p3 }
 0x40e   : > { %2443 = shalt.err (!%p2440_p2)
}
 0x40f   : > { %s2544_s29 = smov 128   ;;  %s2545_s28 = smov 8  }
 0x410   : > { %2240 = dma.vmem_to_hbm [thread:$0]  (%p3193_p13), %s3101_s18, 2048, %s3099_s1, %s3107_s7, %s2544_s29, %s2544_s29, %s2545_s28  }
 0x411 PF: > { %p2252_p4 = scmp.ge.s32.totalorder %s2526_s8, 2  ;;  %s1709_s11 = sand.u32 1, %s2498_s26  }
 0x412   : > { %p3194_p6 = scmp.ne.s32.totalorder %s3182_s17, 0  ;;  %s1710_s12 = scalar_lea.sflag [#allocation8], %s1709_s11 }
 0x414   : > { %p2247_p8 = pnand %p2252_p4, %p3194_p6 }
 0x416   : > { %2493 = dma.done.wait (!%p2247_p8), %s1710_s12, 2048  }
 0x417   : > { %2495 = vsyncadd (!%p2247_p8), %s1710_s12, 4294965248  ;;  %s26_s8 = sadd.s32 1, %s2526_s8   ;;  %s3195_s22 = sld [smem:[#allocation34_spill]] }
 0x418   : > { %p23_p10 = scmp.ge.s32.totalorder %s26_s8, 6   ;;  %s3196_s28 = sld [smem:[#allocation30_spill]] }
 0x419   : > { %s3197_s29 = sld [smem:[#allocation31_spill]]  ;;  %s3198_s30 = sld [smem:[#allocation32_spill]] }
 0x41a   : > { %s3199_s7 = sld [smem:[#allocation33_spill]]  ;;  %s3200_s26 = smov %s2502_s27 }
 0x41b   : > { %s3201_s27 = smov %s2506_s0  ;;  %25 = sbr.rel (!%p23_p10) target bundleno = 22 (0x16), region = 796 }
 0x41d   : > { %s3202_s0 = smov %s3195_s22 }
 0x422   :  { %1715 = vsyncpa [#allocation7], 1 }
 0x423   :  { %1717 = vsyncpa [#allocation7 + $0x1], 1 }
 0x424   :  { %1718 = vsyncpa [#allocation8], 1 }
 0x425   :  { %1720 = vsyncpa [#allocation8 + $0x1], 1 }
 0x426   :  { %1721 = vsyncmov [#allocation3] }
 0x429   :  { %s1722_s16 = vpop.sfrf %1721 }
 0x42a   :  { %p2177_p13 = scmp.ne.s32.totalorder %s1722_s16, 0 }
 0x42c   :  { %1726 = shalt.err (%p2177_p13)  }
 0x42d   :  { %1728 = vsyncmov [#allocation3 + $0x1] }
 0x430   :  { %s1729_s17 = vpop.sfrf %1728 }
 0x431   :  { %p2178_p12 = scmp.ne.s32.totalorder %s1729_s17, 0 }
 0x433   :  { %1733 = shalt.err (%p2178_p12)  }

</bundles_post_ra>
